<compile_context>
chip_gen: v5e
topology: v5e:2x2
jax: 0.10.0
libtpu: 0.0.40
codegen_flags: <defaults>
</compile_context>

<pallas_src>
import functools
import math

import jax
import jax.numpy as jnp
from jax import lax
from jax.experimental import pallas as pl
from jax.experimental.pallas import tpu as pltpu


# ---------------------------------------------------------------------------
# Kernel
# ---------------------------------------------------------------------------
def _layer_norm(x, w, b, eps=1e-5):
    mean = jnp.mean(x, axis=-1, keepdims=True)
    var = jnp.mean((x - mean) * (x - mean), axis=-1, keepdims=True)
    return (x - mean) * lax.rsqrt(var + eps) * w + b


def te_stack_kernel(
    x_ref, mask_ref,
    wqkv_ref, bqkv_ref, wo_ref, bo_ref,
    ln1w_ref, ln1b_ref,
    w1_ref, b1_ref, w2_ref, b2_ref,
    ln2w_ref, ln2b_ref,
    out_ref,
    carry_ref, qkv_ref, attn_ref,
    *, num_heads, head_dim, tb, seq_len,
):
    S = seq_len
    E = num_heads * head_dim
    M = tb * S
    scale = 1.0 / math.sqrt(head_dim)
    layer = pl.program_id(1)

    # Layer 0 of each batch block: load the f32 input into the resident carry.
    @pl.when(layer == 0)
    def _():
        carry_ref[...] = x_ref[...].reshape(M, E).astype(jnp.float32)

    x = carry_ref[...]                        # (M, E) f32 residual stream
    x_bf = x.astype(jnp.bfloat16)             # single bf16 cast per layer

    # --- fused QKV projection (pre-transposed bf16 weight, f32 accum) -------
    qkv_ref[...] = (
        jnp.dot(x_bf, wqkv_ref[...], preferred_element_type=jnp.float32)
        + bqkv_ref[...])                      # (M, 3E) f32 VMEM slab

    # --- multi-head self attention -------------------------------------------
    # Per-head outputs go straight into the attn VMEM slab: no Python-list
    # concatenates, bounded live ranges.  Static loops (tb, heads are small);
    # dynamic fori over heads is avoided because head_dim < 128 would force
    # dynamic minor-dim slicing.
    for b in range(tb):
        r0 = b * S
        mask_row = mask_ref[b]                # (1, S) additive key mask, f32
        for h in range(num_heads):
            c0 = h * head_dim
            q = (qkv_ref[r0:r0 + S, c0:c0 + head_dim] * scale
                 ).astype(jnp.bfloat16)
            k = qkv_ref[r0:r0 + S, E + c0:E + c0 + head_dim
                        ].astype(jnp.bfloat16)
            v = qkv_ref[r0:r0 + S, 2 * E + c0:2 * E + c0 + head_dim
                        ].astype(jnp.bfloat16)
            # q @ k^T without an explicit transpose (contract last dims).
            scores = lax.dot_general(
                q, k, (((1,), (1,)), ((), ())),
                preferred_element_type=jnp.float32)            # (S, S) f32
            # (1, S) operand broadcast along sublanes; the (S, S) mask is
            # never materialized.
            scores = scores + mask_row
            m = jnp.max(scores, axis=-1, keepdims=True)        # f32 stats
            p = jnp.exp(scores - m)
            denom = jnp.sum(p, axis=-1, keepdims=True)
            o = jnp.dot(p.astype(jnp.bfloat16), v,
                        preferred_element_type=jnp.float32)    # (S, D)
            # Normalize the small (S, D) output, not the (S, S) probs; the
            # approx reciprocal runs on the (otherwise idle) EUP slot.
            attn_ref[r0:r0 + S, c0:c0 + head_dim] = (
                o * pl.reciprocal(denom, approx=True))

    proj = jnp.dot(attn_ref[...].astype(jnp.bfloat16), wo_ref[...],
                   preferred_element_type=jnp.float32) + bo_ref[...]

    # --- residual + layernorm 1 ----------------------------------------------
    res1 = x + proj
    ln1 = _layer_norm(res1, ln1w_ref[...], ln1b_ref[...])

    # --- feed forward ---------------------------------------------------------
    hidden = jnp.dot(ln1.astype(jnp.bfloat16), w1_ref[...],
                     preferred_element_type=jnp.float32) + b1_ref[...]
    hidden = jnp.maximum(hidden, 0.0)
    ffn = jnp.dot(hidden.astype(jnp.bfloat16), w2_ref[...],
                  preferred_element_type=jnp.float32) + b2_ref[...]

    # --- residual + layernorm 2 ----------------------------------------------
    res2 = ln1 + ffn
    ln2 = _layer_norm(res2, ln2w_ref[...], ln2b_ref[...])

    # f32 residual carried to the next layer (no bf16 inter-layer drift).
    carry_ref[...] = ln2

    @pl.when(layer == pl.num_programs(1) - 1)
    def _():
        out_ref[...] = ln2.reshape(tb, S, E).astype(out_ref.dtype)


# ---------------------------------------------------------------------------
# Wrapper
# ---------------------------------------------------------------------------
def _pick_batch_block(B, S, target_rows=512):
    """Largest divisor of B with tb*S <= ~512 rows, and >=2 blocks when B>=2
    so the 'parallel' grid axis can be split across v7x's two TensorCores."""
    cap = max(1, target_rows // max(S, 1))
    cap = min(cap, B)
    if B > 1:
        cap = max(1, min(cap, B // 2))
    tb = 1
    for d in range(1, B + 1):
        if B % d == 0 and d <= cap:
            tb = d
    return tb


def _vmem_limit_bytes():
    """~85% of physical VMEM: ~54 MiB on v7x, ~108 MiB on v5e/v6e."""
    try:
        cap = pltpu.get_tpu_info().vmem_capacity_bytes
        if cap:
            return int(cap * 0.85)
    except Exception:
        pass
    return 64 * 1024 * 1024


def te_forward(features_src, key_padding_mask, layer_params, *, num_heads,
               block_b=None):
    """TE.forward: whole encoder stack in one fused pallas_call."""
    B, S, E = features_src.shape
    num_layers = len(layer_params)
    F = layer_params[0]["w1"].shape[1]
    head_dim = E // num_heads
    tb = block_b if block_b is not None else _pick_batch_block(B, S)
    assert B % tb == 0
    M = tb * S

    mask_add = jnp.where(key_padding_mask, -1e9, 0.0).astype(jnp.float32)
    mask_add = mask_add.reshape(B, 1, S)

    # Stack per-layer weights along a leading layer axis; the layer grid axis
    # indexes it via the BlockSpec index_map.
    stacked = {k: jnp.stack([p[k] for p in layer_params])
               for k in layer_params[0]}

    def wspec(shape):
        # Leading `None` squeezes the layer axis inside the kernel.  These
        # blocks change along the inner (layer) grid axis, so default
        # double-buffering prefetches the next layer's weights during the
        # current layer's compute.
        return pl.BlockSpec((None,) + shape, lambda i, l: (l, 0, 0))

    kernel = functools.partial(
        te_stack_kernel,
        num_heads=num_heads, head_dim=head_dim, tb=tb, seq_len=S,
    )

    return pl.pallas_call(
        kernel,
        out_shape=jax.ShapeDtypeStruct((B, S, E), features_src.dtype),
        grid_spec=pltpu.PrefetchScalarGridSpec(
            num_scalar_prefetch=0,
            grid=(B // tb, num_layers),
            in_specs=[
                pl.BlockSpec((tb, S, E), lambda i, l: (i, 0, 0)),   # x (f32)
                pl.BlockSpec((tb, 1, S), lambda i, l: (i, 0, 0)),   # mask
                wspec((E, 3 * E)),   # wqkv  (pre-transposed, bf16)
                wspec((1, 3 * E)),   # bqkv
                wspec((E, E)),       # wo    (pre-transposed, bf16)
                wspec((1, E)),       # bo
                wspec((1, E)),       # ln1 weight
                wspec((1, E)),       # ln1 bias
                wspec((E, F)),       # w1    (pre-transposed, bf16)
                wspec((1, F)),       # b1
                wspec((F, E)),       # w2    (pre-transposed, bf16)
                wspec((1, E)),       # b2
                wspec((1, E)),       # ln2 weight
                wspec((1, E)),       # ln2 bias
            ],
            out_specs=pl.BlockSpec((tb, S, E), lambda i, l: (i, 0, 0)),
            scratch_shapes=[
                pltpu.VMEM((M, E), jnp.float32),       # f32 residual carry
                pltpu.VMEM((M, 3 * E), jnp.float32),   # QKV slab
                pltpu.VMEM((M, E), jnp.float32),       # attention output slab
            ],
        ),
        compiler_params=pltpu.CompilerParams(
            dimension_semantics=("parallel", "arbitrary"),
            vmem_limit_bytes=_vmem_limit_bytes(),
        ),
    )(
        features_src, mask_add,
        stacked["wqkv"], stacked["bqkv"],
        stacked["wo"], stacked["bo"],
        stacked["ln1_w"], stacked["ln1_b"],
        stacked["w1"], stacked["b1"],
        stacked["w2"], stacked["b2"],
        stacked["ln2_w"], stacked["ln2_b"],
    )


# ---------------------------------------------------------------------------
# Pure-JAX f32 reference (for correctness check)
# ---------------------------------------------------------------------------
def te_forward_ref(x, key_padding_mask, layer_params, *, num_heads):
    B, S, E = x.shape
    D = E // num_heads
    mask_add = jnp.where(key_padding_mask, -1e9, 0.0)[:, None, None, :]

    def ln(y, w, b):
        m = jnp.mean(y, -1, keepdims=True)
        var = jnp.mean((y - m) ** 2, -1, keepdims=True)
        return (y - m) / jnp.sqrt(var + 1e-5) * w[0] + b[0]

    for p in layer_params:
        wqkv = p["wqkv"].astype(jnp.float32)
        wo = p["wo"].astype(jnp.float32)
        w1 = p["w1"].astype(jnp.float32)
        w2 = p["w2"].astype(jnp.float32)

        qkv = jnp.einsum("bse,ef->bsf", x, wqkv) + p["bqkv"][0]
        q, k, v = jnp.split(qkv, 3, axis=-1)
        q = q.reshape(B, S, num_heads, D).transpose(0, 2, 1, 3)
        k = k.reshape(B, S, num_heads, D).transpose(0, 2, 1, 3)
        v = v.reshape(B, S, num_heads, D).transpose(0, 2, 1, 3)
        scores = jnp.einsum("bhqd,bhkd->bhqk", q, k) / math.sqrt(D) + mask_add
        attn = jax.nn.softmax(scores, axis=-1)
        o = jnp.einsum("bhqk,bhkd->bhqd", attn, v)
        o = o.transpose(0, 2, 1, 3).reshape(B, S, E)
        proj = jnp.einsum("bse,ef->bsf", o, wo) + p["bo"][0]

        ln1 = ln(x + proj, p["ln1_w"], p["ln1_b"])
        h = jnp.maximum(jnp.einsum("bse,ef->bsf", ln1, w1) + p["b1"][0], 0.0)
        ffn = jnp.einsum("bsf,fe->bse", h, w2) + p["b2"][0]
        x = ln(ln1 + ffn, p["ln2_w"], p["ln2_b"])
    return x


# ---------------------------------------------------------------------------
# Deterministic parameter construction (weights pre-transposed, bf16)
# ---------------------------------------------------------------------------
def make_layer_params(key, embed_dim, ffn_dim):
    ks = jax.random.split(key, 6)
    s = 0.05
    E, F = embed_dim, ffn_dim
    wdt = jnp.bfloat16
    return {
        "wqkv": (s * jax.random.normal(ks[0], (E, 3 * E), jnp.float32)).astype(wdt),
        "bqkv": jnp.zeros((1, 3 * E), jnp.float32),
        "wo": (s * jax.random.normal(ks[1], (E, E), jnp.float32)).astype(wdt),
        "bo": jnp.zeros((1, E), jnp.float32),
        "ln1_w": jnp.ones((1, E), jnp.float32),
        "ln1_b": jnp.zeros((1, E), jnp.float32),
        "w1": (s * jax.random.normal(ks[2], (E, F), jnp.float32)).astype(wdt),
        "b1": 0.01 * jax.random.normal(ks[3], (1, F), jnp.float32),
        "w2": (s * jax.random.normal(ks[4], (F, E), jnp.float32)).astype(wdt),
        "b2": 0.01 * jax.random.normal(ks[5], (1, E), jnp.float32),
        "ln2_w": jnp.ones((1, E), jnp.float32),
        "ln2_b": jnp.zeros((1, E), jnp.float32),
    }


if __name__ == "__main__":
    B, S, E = 2, 8, 32
    NUM_HEADS = 4
    FFN = 64
    NUM_LAYERS = 2

    root = jax.random.PRNGKey(0)
    k_x, k_m, *k_layers = jax.random.split(root, 2 + NUM_LAYERS)

    features_src = jax.random.normal(k_x, (B, S, E), jnp.float32)
    # key_padding_mask: True == padded position; last 2 keys of batch 1 padded.
    key_padding_mask = jnp.zeros((B, S), jnp.bool_).at[1, -2:].set(True)

    # _get_clones uses deepcopy => every clone starts with identical weights.
    base_params = make_layer_params(k_layers[0], E, FFN)
    layer_params = [base_params for _ in range(NUM_LAYERS)]

    out = te_forward(features_src, key_padding_mask, layer_params,
                     num_heads=NUM_HEADS)
    out = jax.block_until_ready(out)

    ref = te_forward_ref(features_src, key_padding_mask, layer_params,
                         num_heads=NUM_HEADS)
    assert out.shape == (B, S, E)
    max_err = float(jnp.max(jnp.abs(out - ref)))
    # bf16 matmul operands, but f32 residual carry across layers.
    assert jnp.allclose(out, ref, atol=2e-2, rtol=2e-2), (
        f"mismatch vs reference (max abs err {max_err})"
    )

    print("KERNEL_OK")
</pallas_src>

<mosaic_0001>
module attributes {stable_mosaic.version = 11 : i64} {
  func.func @te_stack_kernel(%arg0: i32, %arg1: i32, %arg2: memref<1x8x32xf32, #tpu.memory_space<vmem>>, %arg3: memref<1x1x8xf32, #tpu.memory_space<vmem>>, %arg4: memref<1x32x96xbf16, #tpu.memory_space<vmem>>, %arg5: memref<1x1x96xf32, #tpu.memory_space<vmem>>, %arg6: memref<1x32x32xbf16, #tpu.memory_space<vmem>>, %arg7: memref<1x1x32xf32, #tpu.memory_space<vmem>>, %arg8: memref<1x1x32xf32, #tpu.memory_space<vmem>>, %arg9: memref<1x1x32xf32, #tpu.memory_space<vmem>>, %arg10: memref<1x32x64xbf16, #tpu.memory_space<vmem>>, %arg11: memref<1x1x64xf32, #tpu.memory_space<vmem>>, %arg12: memref<1x64x32xbf16, #tpu.memory_space<vmem>>, %arg13: memref<1x1x32xf32, #tpu.memory_space<vmem>>, %arg14: memref<1x1x32xf32, #tpu.memory_space<vmem>>, %arg15: memref<1x1x32xf32, #tpu.memory_space<vmem>>, %arg16: memref<1x8x32xf32, #tpu.memory_space<vmem>>, %arg17: memref<8x32xf32, #tpu.memory_space<vmem>>, %arg18: memref<8x96xf32, #tpu.memory_space<vmem>>, %arg19: memref<8x32xf32, #tpu.memory_space<vmem>>) attributes {dimension_semantics = [#tpu.dimension_semantics<parallel>, #tpu.dimension_semantics<arbitrary>], iteration_bounds = array<i64: 2, 2>, scalar_prefetch = 0 : i64, scratch_operands = 3 : i64, tpu.core_type = #tpu.core_type<tc>, window_params = [{transform_indices = @transform_0, window_bounds = array<i64: 1, 8, 32>}, {transform_indices = @transform_1, window_bounds = array<i64: 1, 1, 8>}, {transform_indices = @transform_2, window_bounds = array<i64: 1, 32, 96>}, {transform_indices = @transform_3, window_bounds = array<i64: 1, 1, 96>}, {transform_indices = @transform_4, window_bounds = array<i64: 1, 32, 32>}, {transform_indices = @transform_5, window_bounds = array<i64: 1, 1, 32>}, {transform_indices = @transform_6, window_bounds = array<i64: 1, 1, 32>}, {transform_indices = @transform_7, window_bounds = array<i64: 1, 1, 32>}, {transform_indices = @transform_8, window_bounds = array<i64: 1, 32, 64>}, {transform_indices = @transform_9, window_bounds = array<i64: 1, 1, 64>}, {transform_indices = @transform_10, window_bounds = array<i64: 1, 64, 32>}, {transform_indices = @transform_11, window_bounds = array<i64: 1, 1, 32>}, {transform_indices = @transform_12, window_bounds = array<i64: 1, 1, 32>}, {transform_indices = @transform_13, window_bounds = array<i64: 1, 1, 32>}, {transform_indices = @transform_14, window_bounds = array<i64: 1, 8, 32>}]} {
    %c0_i32 = arith.constant 0 : i32
    %0 = arith.cmpi eq, %arg1, %c0_i32 : i32
    %1 = arith.extui %0 : i1 to i32
    %c0_i32_0 = arith.constant 0 : i32
    %2 = arith.cmpi ne, %1, %c0_i32_0 : i32
    scf.if %2 {
      %c0_103 = arith.constant 0 : index
      %c0_104 = arith.constant 0 : index
      %c0_105 = arith.constant 0 : index
      %200 = vector.load %arg2[%c0_103, %c0_104, %c0_105] : memref<1x8x32xf32, #tpu.memory_space<vmem>>, vector<1x8x32xf32>
      %201 = vector.shape_cast %200 : vector<1x8x32xf32> to vector<8x32xf32>
      %c0_106 = arith.constant 0 : index
      %c0_107 = arith.constant 0 : index
      %202 = vector.load %arg17[%c0_106, %c0_107] : memref<8x32xf32, #tpu.memory_space<vmem>>, vector<8x32xf32>
      tpu.vector_store %arg17[%c0_106, %c0_107], %201 {strides = array<i32>} : memref<8x32xf32, #tpu.memory_space<vmem>>, vector<8x32xf32>,
    } else {
    }
    %c0 = arith.constant 0 : index
    %c0_1 = arith.constant 0 : index
    %3 = vector.load %arg17[%c0, %c0_1] : memref<8x32xf32, #tpu.memory_space<vmem>>, vector<8x32xf32>
    %4 = arith.truncf %3 : vector<8x32xf32> to vector<8x32xbf16>
    %c0_2 = arith.constant 0 : index
    %c0_3 = arith.constant 0 : index
    %c0_4 = arith.constant 0 : index
    %5 = vector.load %arg4[%c0_2, %c0_3, %c0_4] : memref<1x32x96xbf16, #tpu.memory_space<vmem>>, vector<1x32x96xbf16>
    %6 = vector.shape_cast %5 : vector<1x32x96xbf16> to vector<32x96xbf16>
    %cst = arith.constant dense<0.000000e+00> : vector<8x96xf32>
    %7 = tpu.matmul %4, %6, %cst {dimension_numbers = #tpu.dot_dimension_numbers<[1], [0], [0], [1], [0, 0, 1, 1], [], []>} : vector<8x32xbf16>, vector<32x96xbf16>, vector<8x96xf32> -> vector<8x96xf32>
    %c0_5 = arith.constant 0 : index
    %c0_6 = arith.constant 0 : index
    %c0_7 = arith.constant 0 : index
    %8 = vector.load %arg5[%c0_5, %c0_6, %c0_7] : memref<1x1x96xf32, #tpu.memory_space<vmem>>, vector<1x1x96xf32>
    %9 = vector.shape_cast %8 : vector<1x1x96xf32> to vector<1x96xf32>
    %10 = vector.broadcast %9 : vector<1x96xf32> to vector<8x96xf32>
    %11 = arith.addf %7, %10 : vector<8x96xf32>
    %c0_8 = arith.constant 0 : index
    %c0_9 = arith.constant 0 : index
    %12 = vector.load %arg18[%c0_8, %c0_9] : memref<8x96xf32, #tpu.memory_space<vmem>>, vector<8x96xf32>
    tpu.vector_store %arg18[%c0_8, %c0_9], %11 {strides = array<i32>} : memref<8x96xf32, #tpu.memory_space<vmem>>, vector<8x96xf32>,
    %c0_10 = arith.constant 0 : index
    %c0_11 = arith.constant 0 : index
    %c0_12 = arith.constant 0 : index
    %13 = vector.load %arg3[%c0_10, %c0_11, %c0_12] : memref<1x1x8xf32, #tpu.memory_space<vmem>>, vector<1x1x8xf32>
    %14 = vector.shape_cast %13 : vector<1x1x8xf32> to vector<1x8xf32>
    %c0_13 = arith.constant 0 : index
    %c0_14 = arith.constant 0 : index
    %15 = vector.load %arg18[%c0_13, %c0_14] : memref<8x96xf32, #tpu.memory_space<vmem>>, vector<8x8xf32>
    %cst_15 = arith.constant 0.353553385 : f32
    %16 = vector.broadcast %cst_15 : f32 to vector<8x8xf32>
    %17 = arith.mulf %15, %16 : vector<8x8xf32>
    %18 = arith.truncf %17 : vector<8x8xf32> to vector<8x8xbf16>
    %c0_16 = arith.constant 0 : index
    %c32 = arith.constant 32 : index
    %19 = vector.load %arg18[%c0_16, %c32] : memref<8x96xf32, #tpu.memory_space<vmem>>, vector<8x8xf32>
    %20 = arith.truncf %19 : vector<8x8xf32> to vector<8x8xbf16>
    %c0_17 = arith.constant 0 : index
    %c64 = arith.constant 64 : index
    %21 = vector.load %arg18[%c0_17, %c64] : memref<8x96xf32, #tpu.memory_space<vmem>>, vector<8x8xf32>
    %22 = arith.truncf %21 : vector<8x8xf32> to vector<8x8xbf16>
    %cst_18 = arith.constant dense<0.000000e+00> : vector<8x8xf32>
    %23 = tpu.matmul %18, %20, %cst_18 {dimension_numbers = #tpu.dot_dimension_numbers<[1], [1], [0], [0], [0, 0, 1, 0], [], []>} : vector<8x8xbf16>, vector<8x8xbf16>, vector<8x8xf32> -> vector<8x8xf32>
    %24 = vector.broadcast %14 : vector<1x8xf32> to vector<8x8xf32>
    %25 = arith.addf %23, %24 : vector<8x8xf32>
    %cst_19 = arith.constant dense<0xFF800000> : vector<8xf32>
    %26 = vector.multi_reduction <maximumf>, %25, %cst_19 [1] : vector<8x8xf32> to vector<8xf32>
    %27 = vector.shape_cast %26 : vector<8xf32> to vector<8x1xf32>
    %28 = vector.broadcast %27 : vector<8x1xf32> to vector<8x8xf32>
    %29 = arith.subf %25, %28 : vector<8x8xf32>
    %30 = math.exp %29 : vector<8x8xf32>
    %cst_20 = arith.constant dense<0.000000e+00> : vector<8xf32>
    %31 = vector.multi_reduction <add>, %30, %cst_20 [1] : vector<8x8xf32> to vector<8xf32>
    %32 = vector.shape_cast %31 : vector<8xf32> to vector<8x1xf32>
    %33 = arith.truncf %30 : vector<8x8xf32> to vector<8x8xbf16>
    %cst_21 = arith.constant dense<0.000000e+00> : vector<8x8xf32>
    %34 = tpu.matmul %33, %22, %cst_21 {dimension_numbers = #tpu.dot_dimension_numbers<[1], [0], [0], [1], [0, 0, 1, 1], [], []>} : vector<8x8xbf16>, vector<8x8xbf16>, vector<8x8xf32> -> vector<8x8xf32>
    %35 = tpu.reciprocal %32 {approx = true} : vector<8x1xf32> -> vector<8x1xf32>
    %36 = vector.broadcast %35 : vector<8x1xf32> to vector<8x8xf32>
    %37 = arith.mulf %34, %36 : vector<8x8xf32>
    %c0_22 = arith.constant 0 : index
    %c0_23 = arith.constant 0 : index
    %38 = vector.load %arg19[%c0_22, %c0_23] : memref<8x32xf32, #tpu.memory_space<vmem>>, vector<8x8xf32>
    tpu.vector_store %arg19[%c0_22, %c0_23], %37 {strides = array<i32>} : memref<8x32xf32, #tpu.memory_space<vmem>>, vector<8x8xf32>,
    %c0_24 = arith.constant 0 : index
    %c8 = arith.constant 8 : index
    %39 = vector.load %arg18[%c0_24, %c8] : memref<8x96xf32, #tpu.memory_space<vmem>>, vector<8x8xf32>
    %cst_25 = arith.constant 0.353553385 : f32
    %40 = vector.broadcast %cst_25 : f32 to vector<8x8xf32>
    %41 = arith.mulf %39, %40 : vector<8x8xf32>
    %42 = arith.truncf %41 : vector<8x8xf32> to vector<8x8xbf16>
    %c0_26 = arith.constant 0 : index
    %c40 = arith.constant 40 : index
    %43 = vector.load %arg18[%c0_26, %c40] : memref<8x96xf32, #tpu.memory_space<vmem>>, vector<8x8xf32>
    %44 = arith.truncf %43 : vector<8x8xf32> to vector<8x8xbf16>
    %c0_27 = arith.constant 0 : index
    %c72 = arith.constant 72 : index
    %45 = vector.load %arg18[%c0_27, %c72] : memref<8x96xf32, #tpu.memory_space<vmem>>, vector<8x8xf32>
    %46 = arith.truncf %45 : vector<8x8xf32> to vector<8x8xbf16>
    %cst_28 = arith.constant dense<0.000000e+00> : vector<8x8xf32>
    %47 = tpu.matmul %42, %44, %cst_28 {dimension_numbers = #tpu.dot_dimension_numbers<[1], [1], [0], [0], [0, 0, 1, 0], [], []>} : vector<8x8xbf16>, vector<8x8xbf16>, vector<8x8xf32> -> vector<8x8xf32>
    %48 = vector.broadcast %14 : vector<1x8xf32> to vector<8x8xf32>
    %49 = arith.addf %47, %48 : vector<8x8xf32>
    %cst_29 = arith.constant dense<0xFF800000> : vector<8xf32>
    %50 = vector.multi_reduction <maximumf>, %49, %cst_29 [1] : vector<8x8xf32> to vector<8xf32>
    %51 = vector.shape_cast %50 : vector<8xf32> to vector<8x1xf32>
    %52 = vector.broadcast %51 : vector<8x1xf32> to vector<8x8xf32>
    %53 = arith.subf %49, %52 : vector<8x8xf32>
    %54 = math.exp %53 : vector<8x8xf32>
    %cst_30 = arith.constant dense<0.000000e+00> : vector<8xf32>
    %55 = vector.multi_reduction <add>, %54, %cst_30 [1] : vector<8x8xf32> to vector<8xf32>
    %56 = vector.shape_cast %55 : vector<8xf32> to vector<8x1xf32>
    %57 = arith.truncf %54 : vector<8x8xf32> to vector<8x8xbf16>
    %cst_31 = arith.constant dense<0.000000e+00> : vector<8x8xf32>
    %58 = tpu.matmul %57, %46, %cst_31 {dimension_numbers = #tpu.dot_dimension_numbers<[1], [0], [0], [1], [0, 0, 1, 1], [], []>} : vector<8x8xbf16>, vector<8x8xbf16>, vector<8x8xf32> -> vector<8x8xf32>
    %59 = tpu.reciprocal %56 {approx = true} : vector<8x1xf32> -> vector<8x1xf32>
    %60 = vector.broadcast %59 : vector<8x1xf32> to vector<8x8xf32>
    %61 = arith.mulf %58, %60 : vector<8x8xf32>
    %c0_32 = arith.constant 0 : index
    %c8_33 = arith.constant 8 : index
    %62 = vector.load %arg19[%c0_32, %c8_33] : memref<8x32xf32, #tpu.memory_space<vmem>>, vector<8x8xf32>
    tpu.vector_store %arg19[%c0_32, %c8_33], %61 {strides = array<i32>} : memref<8x32xf32, #tpu.memory_space<vmem>>, vector<8x8xf32>,
    %c0_34 = arith.constant 0 : index
    %c16 = arith.constant 16 : index
    %63 = vector.load %arg18[%c0_34, %c16] : memref<8x96xf32, #tpu.memory_space<vmem>>, vector<8x8xf32>
    %cst_35 = arith.constant 0.353553385 : f32
    %64 = vector.broadcast %cst_35 : f32 to vector<8x8xf32>
    %65 = arith.mulf %63, %64 : vector<8x8xf32>
    %66 = arith.truncf %65 : vector<8x8xf32> to vector<8x8xbf16>
    %c0_36 = arith.constant 0 : index
    %c48 = arith.constant 48 : index
    %67 = vector.load %arg18[%c0_36, %c48] : memref<8x96xf32, #tpu.memory_space<vmem>>, vector<8x8xf32>
    %68 = arith.truncf %67 : vector<8x8xf32> to vector<8x8xbf16>
    %c0_37 = arith.constant 0 : index
    %c80 = arith.constant 80 : index
    %69 = vector.load %arg18[%c0_37, %c80] : memref<8x96xf32, #tpu.memory_space<vmem>>, vector<8x8xf32>
    %70 = arith.truncf %69 : vector<8x8xf32> to vector<8x8xbf16>
    %cst_38 = arith.constant dense<0.000000e+00> : vector<8x8xf32>
    %71 = tpu.matmul %66, %68, %cst_38 {dimension_numbers = #tpu.dot_dimension_numbers<[1], [1], [0], [0], [0, 0, 1, 0], [], []>} : vector<8x8xbf16>, vector<8x8xbf16>, vector<8x8xf32> -> vector<8x8xf32>
    %72 = vector.broadcast %14 : vector<1x8xf32> to vector<8x8xf32>
    %73 = arith.addf %71, %72 : vector<8x8xf32>
    %cst_39 = arith.constant dense<0xFF800000> : vector<8xf32>
    %74 = vector.multi_reduction <maximumf>, %73, %cst_39 [1] : vector<8x8xf32> to vector<8xf32>
    %75 = vector.shape_cast %74 : vector<8xf32> to vector<8x1xf32>
    %76 = vector.broadcast %75 : vector<8x1xf32> to vector<8x8xf32>
    %77 = arith.subf %73, %76 : vector<8x8xf32>
    %78 = math.exp %77 : vector<8x8xf32>
    %cst_40 = arith.constant dense<0.000000e+00> : vector<8xf32>
    %79 = vector.multi_reduction <add>, %78, %cst_40 [1] : vector<8x8xf32> to vector<8xf32>
    %80 = vector.shape_cast %79 : vector<8xf32> to vector<8x1xf32>
    %81 = arith.truncf %78 : vector<8x8xf32> to vector<8x8xbf16>
    %cst_41 = arith.constant dense<0.000000e+00> : vector<8x8xf32>
    %82 = tpu.matmul %81, %70, %cst_41 {dimension_numbers = #tpu.dot_dimension_numbers<[1], [0], [0], [1], [0, 0, 1, 1], [], []>} : vector<8x8xbf16>, vector<8x8xbf16>, vector<8x8xf32> -> vector<8x8xf32>
    %83 = tpu.reciprocal %80 {approx = true} : vector<8x1xf32> -> vector<8x1xf32>
    %84 = vector.broadcast %83 : vector<8x1xf32> to vector<8x8xf32>
    %85 = arith.mulf %82, %84 : vector<8x8xf32>
    %c0_42 = arith.constant 0 : index
    %c16_43 = arith.constant 16 : index
    %86 = vector.load %arg19[%c0_42, %c16_43] : memref<8x32xf32, #tpu.memory_space<vmem>>, vector<8x8xf32>
    tpu.vector_store %arg19[%c0_42, %c16_43], %85 {strides = array<i32>} : memref<8x32xf32, #tpu.memory_space<vmem>>, vector<8x8xf32>,
    %c0_44 = arith.constant 0 : index
    %c24 = arith.constant 24 : index
    %87 = vector.load %arg18[%c0_44, %c24] : memref<8x96xf32, #tpu.memory_space<vmem>>, vector<8x8xf32>
    %cst_45 = arith.constant 0.353553385 : f32
    %88 = vector.broadcast %cst_45 : f32 to vector<8x8xf32>
    %89 = arith.mulf %87, %88 : vector<8x8xf32>
    %90 = arith.truncf %89 : vector<8x8xf32> to vector<8x8xbf16>
    %c0_46 = arith.constant 0 : index
    %c56 = arith.constant 56 : index
    %91 = vector.load %arg18[%c0_46, %c56] : memref<8x96xf32, #tpu.memory_space<vmem>>, vector<8x8xf32>
    %92 = arith.truncf %91 : vector<8x8xf32> to vector<8x8xbf16>
    %c0_47 = arith.constant 0 : index
    %c88 = arith.constant 88 : index
    %93 = vector.load %arg18[%c0_47, %c88] : memref<8x96xf32, #tpu.memory_space<vmem>>, vector<8x8xf32>
    %94 = arith.truncf %93 : vector<8x8xf32> to vector<8x8xbf16>
    %cst_48 = arith.constant dense<0.000000e+00> : vector<8x8xf32>
    %95 = tpu.matmul %90, %92, %cst_48 {dimension_numbers = #tpu.dot_dimension_numbers<[1], [1], [0], [0], [0, 0, 1, 0], [], []>} : vector<8x8xbf16>, vector<8x8xbf16>, vector<8x8xf32> -> vector<8x8xf32>
    %96 = vector.broadcast %14 : vector<1x8xf32> to vector<8x8xf32>
    %97 = arith.addf %95, %96 : vector<8x8xf32>
    %cst_49 = arith.constant dense<0xFF800000> : vector<8xf32>
    %98 = vector.multi_reduction <maximumf>, %97, %cst_49 [1] : vector<8x8xf32> to vector<8xf32>
    %99 = vector.shape_cast %98 : vector<8xf32> to vector<8x1xf32>
    %100 = vector.broadcast %99 : vector<8x1xf32> to vector<8x8xf32>
    %101 = arith.subf %97, %100 : vector<8x8xf32>
    %102 = math.exp %101 : vector<8x8xf32>
    %cst_50 = arith.constant dense<0.000000e+00> : vector<8xf32>
    %103 = vector.multi_reduction <add>, %102, %cst_50 [1] : vector<8x8xf32> to vector<8xf32>
    %104 = vector.shape_cast %103 : vector<8xf32> to vector<8x1xf32>
    %105 = arith.truncf %102 : vector<8x8xf32> to vector<8x8xbf16>
    %cst_51 = arith.constant dense<0.000000e+00> : vector<8x8xf32>
    %106 = tpu.matmul %105, %94, %cst_51 {dimension_numbers = #tpu.dot_dimension_numbers<[1], [0], [0], [1], [0, 0, 1, 1], [], []>} : vector<8x8xbf16>, vector<8x8xbf16>, vector<8x8xf32> -> vector<8x8xf32>
    %107 = tpu.reciprocal %104 {approx = true} : vector<8x1xf32> -> vector<8x1xf32>
    %108 = vector.broadcast %107 : vector<8x1xf32> to vector<8x8xf32>
    %109 = arith.mulf %106, %108 : vector<8x8xf32>
    %c0_52 = arith.constant 0 : index
    %c24_53 = arith.constant 24 : index
    %110 = vector.load %arg19[%c0_52, %c24_53] : memref<8x32xf32, #tpu.memory_space<vmem>>, vector<8x8xf32>
    tpu.vector_store %arg19[%c0_52, %c24_53], %109 {strides = array<i32>} : memref<8x32xf32, #tpu.memory_space<vmem>>, vector<8x8xf32>,
    %c0_54 = arith.constant 0 : index
    %c0_55 = arith.constant 0 : index
    %111 = vector.load %arg19[%c0_54, %c0_55] : memref<8x32xf32, #tpu.memory_space<vmem>>, vector<8x32xf32>
    %112 = arith.truncf %111 : vector<8x32xf32> to vector<8x32xbf16>
    %c0_56 = arith.constant 0 : index
    %c0_57 = arith.constant 0 : index
    %c0_58 = arith.constant 0 : index
    %113 = vector.load %arg6[%c0_56, %c0_57, %c0_58] : memref<1x32x32xbf16, #tpu.memory_space<vmem>>, vector<1x32x32xbf16>
    %114 = vector.shape_cast %113 : vector<1x32x32xbf16> to vector<32x32xbf16>
    %cst_59 = arith.constant dense<0.000000e+00> : vector<8x32xf32>
    %115 = tpu.matmul %112, %114, %cst_59 {dimension_numbers = #tpu.dot_dimension_numbers<[1], [0], [0], [1], [0, 0, 1, 1], [], []>} : vector<8x32xbf16>, vector<32x32xbf16>, vector<8x32xf32> -> vector<8x32xf32>
    %c0_60 = arith.constant 0 : index
    %c0_61 = arith.constant 0 : index
    %c0_62 = arith.constant 0 : index
    %116 = vector.load %arg7[%c0_60, %c0_61, %c0_62] : memref<1x1x32xf32, #tpu.memory_space<vmem>>, vector<1x1x32xf32>
    %117 = vector.shape_cast %116 : vector<1x1x32xf32> to vector<1x32xf32>
    %118 = vector.broadcast %117 : vector<1x32xf32> to vector<8x32xf32>
    %119 = arith.addf %115, %118 : vector<8x32xf32>
    %120 = arith.addf %3, %119 : vector<8x32xf32>
    %c0_63 = arith.constant 0 : index
    %c0_64 = arith.constant 0 : index
    %c0_65 = arith.constant 0 : index
    %121 = vector.load %arg8[%c0_63, %c0_64, %c0_65] : memref<1x1x32xf32, #tpu.memory_space<vmem>>, vector<1x1x32xf32>
    %122 = vector.shape_cast %121 : vector<1x1x32xf32> to vector<1x32xf32>
    %c0_66 = arith.constant 0 : index
    %c0_67 = arith.constant 0 : index
    %c0_68 = arith.constant 0 : index
    %123 = vector.load %arg9[%c0_66, %c0_67, %c0_68] : memref<1x1x32xf32, #tpu.memory_space<vmem>>, vector<1x1x32xf32>
    %124 = vector.shape_cast %123 : vector<1x1x32xf32> to vector<1x32xf32>
    %cst_69 = arith.constant dense<0.000000e+00> : vector<8xf32>
    %125 = vector.multi_reduction <add>, %120, %cst_69 [1] : vector<8x32xf32> to vector<8xf32>
    %126 = vector.shape_cast %125 : vector<8xf32> to vector<8x1xf32>
    %cst_70 = arith.constant 3.200000e+01 : f32
    %127 = vector.broadcast %cst_70 : f32 to vector<8x1xf32>
    %128 = arith.divf %126, %127 : vector<8x1xf32>
    %129 = vector.broadcast %128 : vector<8x1xf32> to vector<8x32xf32>
    %130 = arith.subf %120, %129 : vector<8x32xf32>
    %131 = vector.broadcast %128 : vector<8x1xf32> to vector<8x32xf32>
    %132 = arith.subf %120, %131 : vector<8x32xf32>
    %133 = arith.mulf %130, %132 : vector<8x32xf32>
    %cst_71 = arith.constant dense<0.000000e+00> : vector<8xf32>
    %134 = vector.multi_reduction <add>, %133, %cst_71 [1] : vector<8x32xf32> to vector<8xf32>
    %135 = vector.shape_cast %134 : vector<8xf32> to vector<8x1xf32>
    %cst_72 = arith.constant 3.200000e+01 : f32
    %136 = vector.broadcast %cst_72 : f32 to vector<8x1xf32>
    %137 = arith.divf %135, %136 : vector<8x1xf32>
    %138 = vector.broadcast %128 : vector<8x1xf32> to vector<8x32xf32>
    %139 = arith.subf %120, %138 : vector<8x32xf32>
    %cst_73 = arith.constant 9.99999974E-6 : f32
    %140 = vector.broadcast %cst_73 : f32 to vector<8x1xf32>
    %141 = arith.addf %137, %140 : vector<8x1xf32>
    %142 = math.rsqrt %141 : vector<8x1xf32>
    %143 = vector.broadcast %142 : vector<8x1xf32> to vector<8x32xf32>
    %144 = arith.mulf %139, %143 : vector<8x32xf32>
    %145 = vector.broadcast %122 : vector<1x32xf32> to vector<8x32xf32>
    %146 = arith.mulf %144, %145 : vector<8x32xf32>
    %147 = vector.broadcast %124 : vector<1x32xf32> to vector<8x32xf32>
    %148 = arith.addf %146, %147 : vector<8x32xf32>
    %149 = arith.truncf %148 : vector<8x32xf32> to vector<8x32xbf16>
    %c0_74 = arith.constant 0 : index
    %c0_75 = arith.constant 0 : index
    %c0_76 = arith.constant 0 : index
    %150 = vector.load %arg10[%c0_74, %c0_75, %c0_76] : memref<1x32x64xbf16, #tpu.memory_space<vmem>>, vector<1x32x64xbf16>
    %151 = vector.shape_cast %150 : vector<1x32x64xbf16> to vector<32x64xbf16>
    %cst_77 = arith.constant dense<0.000000e+00> : vector<8x64xf32>
    %152 = tpu.matmul %149, %151, %cst_77 {dimension_numbers = #tpu.dot_dimension_numbers<[1], [0], [0], [1], [0, 0, 1, 1], [], []>} : vector<8x32xbf16>, vector<32x64xbf16>, vector<8x64xf32> -> vector<8x64xf32>
    %c0_78 = arith.constant 0 : index
    %c0_79 = arith.constant 0 : index
    %c0_80 = arith.constant 0 : index
    %153 = vector.load %arg11[%c0_78, %c0_79, %c0_80] : memref<1x1x64xf32, #tpu.memory_space<vmem>>, vector<1x1x64xf32>
    %154 = vector.shape_cast %153 : vector<1x1x64xf32> to vector<1x64xf32>
    %155 = vector.broadcast %154 : vector<1x64xf32> to vector<8x64xf32>
    %156 = arith.addf %152, %155 : vector<8x64xf32>
    %cst_81 = arith.constant 0.000000e+00 : f32
    %157 = vector.broadcast %cst_81 : f32 to vector<8x64xf32>
    %158 = arith.maximumf %156, %157 : vector<8x64xf32>
    %159 = arith.truncf %158 : vector<8x64xf32> to vector<8x64xbf16>
    %c0_82 = arith.constant 0 : index
    %c0_83 = arith.constant 0 : index
    %c0_84 = arith.constant 0 : index
    %160 = vector.load %arg12[%c0_82, %c0_83, %c0_84] : memref<1x64x32xbf16, #tpu.memory_space<vmem>>, vector<1x64x32xbf16>
    %161 = vector.shape_cast %160 : vector<1x64x32xbf16> to vector<64x32xbf16>
    %cst_85 = arith.constant dense<0.000000e+00> : vector<8x32xf32>
    %162 = tpu.matmul %159, %161, %cst_85 {dimension_numbers = #tpu.dot_dimension_numbers<[1], [0], [0], [1], [0, 0, 1, 1], [], []>} : vector<8x64xbf16>, vector<64x32xbf16>, vector<8x32xf32> -> vector<8x32xf32>
    %c0_86 = arith.constant 0 : index
    %c0_87 = arith.constant 0 : index
    %c0_88 = arith.constant 0 : index
    %163 = vector.load %arg13[%c0_86, %c0_87, %c0_88] : memref<1x1x32xf32, #tpu.memory_space<vmem>>, vector<1x1x32xf32>
    %164 = vector.shape_cast %163 : vector<1x1x32xf32> to vector<1x32xf32>
    %165 = vector.broadcast %164 : vector<1x32xf32> to vector<8x32xf32>
    %166 = arith.addf %162, %165 : vector<8x32xf32>
    %167 = arith.addf %148, %166 : vector<8x32xf32>
    %c0_89 = arith.constant 0 : index
    %c0_90 = arith.constant 0 : index
    %c0_91 = arith.constant 0 : index
    %168 = vector.load %arg14[%c0_89, %c0_90, %c0_91] : memref<1x1x32xf32, #tpu.memory_space<vmem>>, vector<1x1x32xf32>
    %169 = vector.shape_cast %168 : vector<1x1x32xf32> to vector<1x32xf32>
    %c0_92 = arith.constant 0 : index
    %c0_93 = arith.constant 0 : index
    %c0_94 = arith.constant 0 : index
    %170 = vector.load %arg15[%c0_92, %c0_93, %c0_94] : memref<1x1x32xf32, #tpu.memory_space<vmem>>, vector<1x1x32xf32>
    %171 = vector.shape_cast %170 : vector<1x1x32xf32> to vector<1x32xf32>
    %cst_95 = arith.constant dense<0.000000e+00> : vector<8xf32>
    %172 = vector.multi_reduction <add>, %167, %cst_95 [1] : vector<8x32xf32> to vector<8xf32>
    %173 = vector.shape_cast %172 : vector<8xf32> to vector<8x1xf32>
    %cst_96 = arith.constant 3.200000e+01 : f32
    %174 = vector.broadcast %cst_96 : f32 to vector<8x1xf32>
    %175 = arith.divf %173, %174 : vector<8x1xf32>
    %176 = vector.broadcast %175 : vector<8x1xf32> to vector<8x32xf32>
    %177 = arith.subf %167, %176 : vector<8x32xf32>
    %178 = vector.broadcast %175 : vector<8x1xf32> to vector<8x32xf32>
    %179 = arith.subf %167, %178 : vector<8x32xf32>
    %180 = arith.mulf %177, %179 : vector<8x32xf32>
    %cst_97 = arith.constant dense<0.000000e+00> : vector<8xf32>
    %181 = vector.multi_reduction <add>, %180, %cst_97 [1] : vector<8x32xf32> to vector<8xf32>
    %182 = vector.shape_cast %181 : vector<8xf32> to vector<8x1xf32>
    %cst_98 = arith.constant 3.200000e+01 : f32
    %183 = vector.broadcast %cst_98 : f32 to vector<8x1xf32>
    %184 = arith.divf %182, %183 : vector<8x1xf32>
    %185 = vector.broadcast %175 : vector<8x1xf32> to vector<8x32xf32>
    %186 = arith.subf %167, %185 : vector<8x32xf32>
    %cst_99 = arith.constant 9.99999974E-6 : f32
    %187 = vector.broadcast %cst_99 : f32 to vector<8x1xf32>
    %188 = arith.addf %184, %187 : vector<8x1xf32>
    %189 = math.rsqrt %188 : vector<8x1xf32>
    %190 = vector.broadcast %189 : vector<8x1xf32> to vector<8x32xf32>
    %191 = arith.mulf %186, %190 : vector<8x32xf32>
    %192 = vector.broadcast %169 : vector<1x32xf32> to vector<8x32xf32>
    %193 = arith.mulf %191, %192 : vector<8x32xf32>
    %194 = vector.broadcast %171 : vector<1x32xf32> to vector<8x32xf32>
    %195 = arith.addf %193, %194 : vector<8x32xf32>
    %c0_100 = arith.constant 0 : index
    %c0_101 = arith.constant 0 : index
    %196 = vector.load %arg17[%c0_100, %c0_101] : memref<8x32xf32, #tpu.memory_space<vmem>>, vector<8x32xf32>
    tpu.vector_store %arg17[%c0_100, %c0_101], %195 {strides = array<i32>} : memref<8x32xf32, #tpu.memory_space<vmem>>, vector<8x32xf32>,
    %c1_i32 = arith.constant 1 : i32
    %197 = arith.cmpi eq, %arg1, %c1_i32 : i32
    %198 = arith.extui %197 : i1 to i32
    %c0_i32_102 = arith.constant 0 : i32
    %199 = arith.cmpi ne, %198, %c0_i32_102 : i32
    scf.if %199 {
      %200 = vector.shape_cast %195 : vector<8x32xf32> to vector<1x8x32xf32>
      %c0_103 = arith.constant 0 : index
      %c0_104 = arith.constant 0 : index
      %c0_105 = arith.constant 0 : index
      %201 = vector.load %arg16[%c0_103, %c0_104, %c0_105] : memref<1x8x32xf32, #tpu.memory_space<vmem>>, vector<1x8x32xf32>
      tpu.vector_store %arg16[%c0_103, %c0_104, %c0_105], %200 {strides = array<i32>} : memref<1x8x32xf32, #tpu.memory_space<vmem>>, vector<1x8x32xf32>,
    } else {
    }
    return
  }
  func.func @transform_0(%arg0: i32, %arg1: i32) -> (i32, i32, i32) {
    %c0_i32 = arith.constant 0 : i32
    %c0_i32_0 = arith.constant 0 : i32
    %c0_i32_1 = arith.constant 0 : i32
    return %arg0, %c0_i32, %c0_i32_0 : i32, i32, i32
  }
  func.func @transform_1(%arg0: i32, %arg1: i32) -> (i32, i32, i32) {
    %c0_i32 = arith.constant 0 : i32
    %c0_i32_0 = arith.constant 0 : i32
    %c0_i32_1 = arith.constant 0 : i32
    return %arg0, %c0_i32, %c0_i32_0 : i32, i32, i32
  }
  func.func @transform_2(%arg0: i32, %arg1: i32) -> (i32, i32, i32) {
    %c0_i32 = arith.constant 0 : i32
    %c0_i32_0 = arith.constant 0 : i32
    %c0_i32_1 = arith.constant 0 : i32
    return %arg1, %c0_i32, %c0_i32_0 : i32, i32, i32
  }
  func.func @transform_3(%arg0: i32, %arg1: i32) -> (i32, i32, i32) {
    %c0_i32 = arith.constant 0 : i32
    %c0_i32_0 = arith.constant 0 : i32
    %c0_i32_1 = arith.constant 0 : i32
    return %arg1, %c0_i32, %c0_i32_0 : i32, i32, i32
  }
  func.func @transform_4(%arg0: i32, %arg1: i32) -> (i32, i32, i32) {
    %c0_i32 = arith.constant 0 : i32
    %c0_i32_0 = arith.constant 0 : i32
    %c0_i32_1 = arith.constant 0 : i32
    return %arg1, %c0_i32, %c0_i32_0 : i32, i32, i32
  }
  func.func @transform_5(%arg0: i32, %arg1: i32) -> (i32, i32, i32) {
    %c0_i32 = arith.constant 0 : i32
    %c0_i32_0 = arith.constant 0 : i32
    %c0_i32_1 = arith.constant 0 : i32
    return %arg1, %c0_i32, %c0_i32_0 : i32, i32, i32
  }
  func.func @transform_6(%arg0: i32, %arg1: i32) -> (i32, i32, i32) {
    %c0_i32 = arith.constant 0 : i32
    %c0_i32_0 = arith.constant 0 : i32
    %c0_i32_1 = arith.constant 0 : i32
    return %arg1, %c0_i32, %c0_i32_0 : i32, i32, i32
  }
  func.func @transform_7(%arg0: i32, %arg1: i32) -> (i32, i32, i32) {
    %c0_i32 = arith.constant 0 : i32
    %c0_i32_0 = arith.constant 0 : i32
    %c0_i32_1 = arith.constant 0 : i32
    return %arg1, %c0_i32, %c0_i32_0 : i32, i32, i32
  }
  func.func @transform_8(%arg0: i32, %arg1: i32) -> (i32, i32, i32) {
    %c0_i32 = arith.constant 0 : i32
    %c0_i32_0 = arith.constant 0 : i32
    %c0_i32_1 = arith.constant 0 : i32
    return %arg1, %c0_i32, %c0_i32_0 : i32, i32, i32
  }
  func.func @transform_9(%arg0: i32, %arg1: i32) -> (i32, i32, i32) {
    %c0_i32 = arith.constant 0 : i32
    %c0_i32_0 = arith.constant 0 : i32
    %c0_i32_1 = arith.constant 0 : i32
    return %arg1, %c0_i32, %c0_i32_0 : i32, i32, i32
  }
  func.func @transform_10(%arg0: i32, %arg1: i32) -> (i32, i32, i32) {
    %c0_i32 = arith.constant 0 : i32
    %c0_i32_0 = arith.constant 0 : i32
    %c0_i32_1 = arith.constant 0 : i32
    return %arg1, %c0_i32, %c0_i32_0 : i32, i32, i32
  }
  func.func @transform_11(%arg0: i32, %arg1: i32) -> (i32, i32, i32) {
    %c0_i32 = arith.constant 0 : i32
    %c0_i32_0 = arith.constant 0 : i32
    %c0_i32_1 = arith.constant 0 : i32
    return %arg1, %c0_i32, %c0_i32_0 : i32, i32, i32
  }
  func.func @transform_12(%arg0: i32, %arg1: i32) -> (i32, i32, i32) {
    %c0_i32 = arith.constant 0 : i32
    %c0_i32_0 = arith.constant 0 : i32
    %c0_i32_1 = arith.constant 0 : i32
    return %arg1, %c0_i32, %c0_i32_0 : i32, i32, i32
  }
  func.func @transform_13(%arg0: i32, %arg1: i32) -> (i32, i32, i32) {
    %c0_i32 = arith.constant 0 : i32
    %c0_i32_0 = arith.constant 0 : i32
    %c0_i32_1 = arith.constant 0 : i32
    return %arg1, %c0_i32, %c0_i32_0 : i32, i32, i32
  }
  func.func @transform_14(%arg0: i32, %arg1: i32) -> (i32, i32, i32) {
    %c0_i32 = arith.constant 0 : i32
    %c0_i32_0 = arith.constant 0 : i32
    %c0_i32_1 = arith.constant 0 : i32
    return %arg0, %c0_i32, %c0_i32_0 : i32, i32, i32
  }
}

</mosaic_0001>

<bundles_post_ra>
// kernel: tpu_custom_call.1
= control target key start
LH: loop header
LB: loop body
LE: loop exit
PB: predicated region body
PF: predicated region fallthrough
CT: control target
= control target key end

     0   :  { %s2619_s0 = inlined_call_operand.hbm [shape: f32[2,8,32], index: 0, kind: input, shape index: {}]   ;;  %s2620_s1 = inlined_call_operand.hbm [shape: f32[2,1,8], index: 1, kind: input, shape index: {}]   ;;  %s2621_s2 = inlined_call_operand.vmem [shape: bf16[2,32,96], index: 2, kind: input, shape index: {}]   ;;  %s2622_s3 = inlined_call_operand.hbm [shape: f32[2,1,96], index: 3, kind: input, shape index: {}]   ;;  %s2623_s4 = inlined_call_operand.vmem [shape: bf16[2,32,32], index: 4, kind: input, shape index: {}]   ;;  %s2624_s5 = inlined_call_operand.vmem [shape: f32[2,1,32], index: 5, kind: input, shape index: {}]   ;;  %s2625_s6 = inlined_call_operand.vmem [shape: f32[2,1,32], index: 6, kind: input, shape index: {}]   ;;  %s2626_s7 = inlined_call_operand.hbm [shape: f32[2,1,32], index: 7, kind: input, shape index: {}]   ;;  %s2627_s8 = inlined_call_operand.vmem [shape: bf16[2,32,64], index: 8, kind: input, shape index: {}]   ;;  %s2628_s9 = inlined_call_operand.vmem [shape: f32[2,1,64], index: 9, kind: input, shape index: {}]   ;;  %s2629_s10 = inlined_call_operand.vmem [shape: bf16[2,64,32], index: 10, kind: input, shape index: {}]   ;;  %s2630_s11 = inlined_call_operand.vmem [shape: f32[2,1,32], index: 11, kind: input, shape index: {}]   ;;  %s2631_s12 = inlined_call_operand.vmem [shape: f32[2,1,32], index: 12, kind: input, shape index: {}]   ;;  %s2632_s13 = inlined_call_operand.hbm [shape: f32[2,1,32], index: 13, kind: input, shape index: {}]   ;;  %s2633_s14 = inlined_call_operand.hbm [shape: f32[2,8,32], index: 14, kind: output, shape index: {}]  }
   0x1   :  { %2651 = sst [smem:[#allocation34_spill]] %s2619_s0 }
   0x2   :  { %2652 = sst [smem:[#allocation35_spill]] %s2620_s1 }
   0x3   :  { %2653 = sst [smem:[#allocation36_spill]] %s2621_s2 }
   0x4   :  { %2654 = sst [smem:[#allocation37_spill]] %s2622_s3 }
   0x5   :  { %2655 = sst [smem:[#allocation38_spill]] %s2623_s4 }
   0x6   :  { %2656 = sst [smem:[#allocation39_spill]] %s2624_s5 }
   0x7   :  { %2657 = sst [smem:[#allocation40_spill]] %s2625_s6 }
   0x8   :  { %2658 = sst [smem:[#allocation41_spill]] %s2626_s7 }
   0x9   :  { %2659 = sst [smem:[#allocation42_spill]] %s2627_s8 }
   0xa   :  { %2660 = sst [smem:[#allocation43_spill]] %s2628_s9 }
   0xb   :  { %2661 = sst [smem:[#allocation44_spill]] %s2629_s10 }
   0xc   :  { %2662 = sst [smem:[#allocation45_spill]] %s2630_s11 }
   0xd   :  { %2663 = sst [smem:[#allocation46_spill]] %s2631_s12 }
   0xe   :  { %2664 = sst [smem:[#allocation47_spill]] %s2632_s13 }
   0xf   :  { %2665 = sst [smem:[#allocation48_spill]] %s2633_s14 }
  0x10   :  { %19 = vsyncpa [#allocation6], 0 }
  0x11   :  { %21 = vsyncpa [#allocation6 + $0x1], 0 }
  0x12   :  { %22 = vsyncpa [#allocation9], 0 }
  0x13   :  { %24 = vsyncpa [#allocation9 + $0x1], 0 }
  0x14   :  { %25 = vsyncpa [#allocation12], 0 }
  0x15   :  { %27 = vsyncpa [#allocation12 + $0x1], 0 }
  0x16   :  { %28 = vsyncpa [#allocation7], 0 }
  0x17   :  { %30 = vsyncpa [#allocation7 + $0x1], 0  ;;  %s2202_s29 = smov 0   ;;  %s2204_s30 = smov 0  }
  0x18   :  { %s2206_s15 = smov 0   ;;  %s2208_s16 = smov 0  }
  0x19   :  { %s2210_s17 = smov 0   ;;  %s2212_s18 = smov 0  }
  0x1a   :  { %s2214_s19 = smov 0   ;;  %s2216_s20 = smov 0  }
  0x1b   :  { %s2218_s21 = smov 0   ;;  %s2220_s22 = smov 0  }
  0x1c   :  { %s2222_s23 = smov 0  }
  0x1d LB: > { %2666 = sst [smem:[#allocation20_spill]] %s2078_s15  ;;  %s2258_s24 = sadd.s32 4294967295, %s2110_s23   ;;  %s2110_s23 = sphi %s2222_s23, %s36_s23   ;;  %s2106_s22 = sphi %s2220_s22, %s2734_s22   ;;  %s2102_s21 = sphi %s2218_s21, %s2733_s21   ;;  %s2098_s20 = sphi %s2216_s20, %s2732_s20   ;;  %s2094_s19 = sphi %s2214_s19, %s2731_s19   ;;  %s2090_s18 = sphi %s2212_s18, %s2730_s18   ;;  %s2086_s17 = sphi %s2210_s17, %s2738_s17   ;;  %s2082_s16 = sphi %s2208_s16, %s2737_s16   ;;  %s2078_s15 = sphi %s2206_s15, %s2728_s15   ;;  %s2074_s30 = sphi %s2204_s30, %s2736_s30   ;;  %s2070_s29 = sphi %s2202_s29, %s2735_s29  }
  0x1e   : > { %2667 = sst [smem:[#allocation21_spill]] %s2082_s16  ;;  %s1570_s25 = sadd.s32 4294967294, %s2110_s23  }
  0x1f   : > { %2668 = sst [smem:[#allocation22_spill]] %s2090_s18  ;;  %p62_p0 = scmp.ne.s32.totalorder %s2090_s18, %s2086_s17 }
  0x20   : > { %2669 = sst [smem:[#allocation23_spill]] %s2094_s19  ;;  %p63_p1 = scmp.eq.s32.totalorder %s2110_s23, 0 }
  0x21   : > { %2670 = sst [smem:[#allocation24_spill]] %s2098_s20  ;;  %p68_p2 = scmp.ne.s32.totalorder %s2086_s17, %s2082_s16 }
  0x22   : > { %2671 = sst [smem:[#allocation25_spill]] %s2102_s21  ;;  %p69_p3 = scmp.eq.s32.totalorder %s2258_s24, 0 }
  0x23   : > { %2672 = sst [smem:[#allocation26_spill]] %s2106_s22  ;;  %p64_p4 = por %p63_p1, %p62_p0 }
  0x24   : > { %p430_p5 = scmp.eq.s32.totalorder %s2258_s24, 3  ;;  %p2274_p6 = por %p69_p3, %p68_p2 }
  0x25   : > { %p436_p7 = scmp.eq.s32.totalorder %s1570_s25, 3  ;;  %p2639_p10 = scmp.lt.s32.totalorder %s2110_s23, 4 }
  0x26   : > { %p2278_p8 = por %p430_p5, %p62_p0  ;;  %s2288_s16 = sand.u32 1, %s2090_s18  }
  0x27   : > { %p2282_p9 = por %p436_p7, %p68_p2  ;;  %p2293_p11 = pnand %p2639_p10, %p64_p4 }
  0x28   : > { %s2674_s26 = scalar_select %p2278_p8, 1, 0 }
  0x29   : > { %s2676_s27 = scalar_select %p2282_p9, 1, 0 }
  0x2a   : > { %2675 = sst [smem:[#allocation27_spill]] %s2674_s26  ;;  %s478_s14 = scalar_lea.vmem [#allocation8], %s2288_s16 }
  0x2b   : > { %2677 = sst [smem:[#allocation28_spill]] %s2676_s27  ;;  %s485_s11 = sshll.u32 %s478_s14, 4  ;;  %s486_s11 = int_to_ptr.vmem [resolvable:$true] %s485_s11 }
  0x2c   : > { %s2679_s1 = sld [smem:[#allocation35_spill]]  ;;  %p1575_p12 = scmp.ge.s32.totalorder %s2110_s23, 1 }
  0x2d   : > { %s2680_s10 = sand.u32 1, %s2110_s23   ;;  %p603_p13 = scmp.lt.s32.totalorder %s2110_s23, 5 }
  0x2e   : > { %s2305_s9 = scalar_lea.sflag [#allocation9], %s2680_s10  ;;  %s45_s26 = sadd.s32 1, %s2102_s21 }
  0x2f   : > { %p2311_p0 = pnand %p1575_p12, %p603_p13  ;;  %s133_s14 = sadd.s32 1, %s2078_s15 }
  0x30   : > { %p46_p2 = scmp.ge.s32.totalorder %s45_s26, 2  ;;  %p140_p4 = scmp.ne.s32.totalorder %s2078_s15, %s2074_s30 }
  0x31   : > { %p146_p5 = scmp.ne.s32.totalorder %s2074_s30, %s2070_s29  ;;  %s2322_s10 = sand.u32 1, %s2078_s15  }
  0x32   : > { %s481_s27 = scalar_lea.hbm %s2679_s1, %s2106_s22  ;;  %s2740_s26 = smov (%p46_p2, %s45_s26), 0 }
  0x33   : > { %s483_s12 = sshll.u32 %s481_s27, 4  ;;  %2682 = sst [smem:[#allocation29_spill]] %s2740_s26  ;;  %s484_s12 = int_to_ptr.hbm [resolvable:$true] %s483_s12 }
  0x34   : > { %1676 = dma.hbm_to_vmem [thread:$0]  (!%p2293_p11), %s484_s12, 16, %s486_s11, %s2305_s9  }
  0x35   : > { %s2683_s11 = sadd.s32 1, %s2106_s22  ;;  %s130_s12 = ssub.s32 %s2102_s21, %s2740_s26 }
  0x36   : > { %s2742_s11 = smov (!%p46_p2, %s2683_s11), %s2106_s22  ;;  %p142_p7 = por %p140_p4, %p63_p1 }
  0x37   : > { %p50_p12 = scmp.ge.s32.totalorder %s2742_s11, 2  ;;  %p131_p13 = scmp.eq.s32.totalorder %s130_s12, 0 }
  0x38   : > { %p2335_p10 = por %p146_p5, %p69_p3  ;;  %p2686_p9 = scmp.lt.s32.totalorder %s2110_s23, 4 }
  0x39   : > { %s2744_s11 = smov (%p50_p12, %s2742_s11), 0  ;;  %s2690_s7 = sld [smem:[#allocation41_spill]] }
  0x3a   : > { %s2684_s27 = scalar_select %p2335_p10, 1, 0 }
  0x3b   : > { %p2341_p8 = pnand %p2686_p9, %p142_p7  ;;  %2688 = sst [smem:[#allocation31_spill]] %s2744_s11 }
  0x3c   : > { %2685 = sst [smem:[#allocation30_spill]] %s2684_s27  ;;  %s52_s26 = ssub.s32 %s2106_s22, %s2744_s11 }
  0x3d   : > { %s2348_s1 = scalar_select %p131_p13, %s2078_s15, %s133_s14  }
  0x3e   : > { %p53_p1 = scmp.eq.s32.totalorder %s52_s26, 0  ;;  %s2691_s4 = sadd.s32 1, %s2090_s18 }
  0x3f   : > { %2689 = sst [smem:[#allocation32_spill]] %s2348_s1  ;;  %s543_s6 = scalar_lea.hbm %s2690_s7, %s2102_s21 }
  0x40   : > { %s2359_s2 = scalar_select %p53_p1, %s2090_s18, %s2691_s4  }
  0x41   : > { %s545_s5 = sshll.u32 %s543_s6, 4  ;;  %s540_s19 = scalar_lea.vmem [#allocation11], %s2322_s10  ;;  %s546_s5 = int_to_ptr.hbm [resolvable:$true] %s545_s5 }
  0x42   : > { %2692 = sst [smem:[#allocation33_spill]] %s2359_s2  ;;  %s547_s27 = sshll.u32 %s540_s19, 4  ;;  %s548_s27 = int_to_ptr.vmem [resolvable:$true] %s547_s27 }
  0x43   : > { %s2693_s14 = sand.u32 1, %s2110_s23   ;;  %s1573_s26 = sshll.u32 %s2288_s16, 3 }
  0x44   : > { %s538_s1 = scalar_lea.sflag [#allocation12], %s2693_s14  ;;  %s1574_s8 = sshll.u32 %s2106_s22, 3 }
  0x45   : > { %1682 = dma.hbm_to_vmem [thread:$0]  (!%p2341_p8), %s546_s5, 16, %s548_s27, %s538_s1  }
  0x46   : > { %s2694_s0 = sld [smem:[#allocation34_spill]]  ;;  %s460_s7 = scalar_lea.vmem [#allocation5], %s1573_s26 }
  0x47   : > { %s468_s11 = sshll.u32 %s460_s7, 4  ;;  %s457_s2 = scalar_lea.sflag [#allocation6], %s2288_s16  ;;  %s469_s11 = int_to_ptr.vmem [resolvable:$true] %s468_s11 }
  0x48   : > { %s2695_s3 = sld [smem:[#allocation37_spill]]  ;;  %s503_s22 = scalar_lea.vmem [#allocation10], %s2322_s10 }
  0x49   : > { %s510_s18 = sshll.u32 %s503_s22, 4  ;;  %s2696_s13 = sld [smem:[#allocation47_spill]]  ;;  %s511_s18 = int_to_ptr.vmem [resolvable:$true] %s510_s18 }
  0x4a   : > { %s591_s12 = scalar_lea.vmem [#allocation13], %s2322_s10 }
  0x4b   : > { %s598_s4 = sshll.u32 %s591_s12, 4  ;;  %s599_s4 = int_to_ptr.vmem [resolvable:$true] %s598_s4 }
  0x4c   : > { %s464_s6 = scalar_lea.hbm %s2694_s0, %s1574_s8 }
  0x4d   : > { %s466_s19 = sshll.u32 %s464_s6, 4  ;;  %s467_s19 = int_to_ptr.hbm [resolvable:$true] %s466_s19 }
  0x4e   : > { %1673 = dma.hbm_to_vmem [thread:$0]  (!%p2293_p11), %s467_s19, 128, %s469_s11, %s457_s2  }
  0x4f   : > { %s506_s14 = scalar_lea.hbm %s2695_s3, %s2102_s21  ;;  %s594_s8 = scalar_lea.hbm %s2696_s13, %s2102_s21 }
  0x50   : > { %s508_s15 = sshll.u32 %s506_s14, 4  ;;  %s596_s16 = sshll.u32 %s594_s8, 4  ;;  %s509_s15 = int_to_ptr.hbm [resolvable:$true] %s508_s15  ;;  %s597_s16 = int_to_ptr.hbm [resolvable:$true] %s596_s16 }
  0x51   : > { %1679 = dma.hbm_to_vmem [thread:$0]  (!%p2341_p8), %s509_s15, 16, %s511_s18, %s2305_s9  }
  0x52   : > { %1685 = dma.hbm_to_vmem [thread:$0]  (!%p2341_p8), %s597_s16, 16, %s599_s4, %s538_s1  }
  0x53   : > { %607 = sbr.rel (%p2311_p0) target bundleno = 1897 (0x769), region = 76  ;;  %s2392_s2 = sand.u32 (!%p2311_p0), 1, %s2086_s17  }
  0x54   : > { %s2649_s9 = sshll.u32 (!%p2311_p0), %s2392_s2, 3  ;;  %s610_s15 = scalar_lea.sflag (!%p2311_p0), [#allocation6], %s2392_s2 }
  0x55   : > { %s2398_s18 = scalar_lea.vmem (!%p2311_p0), [#allocation5], %s2649_s9 }
  0x58   : > { %2049 = dma.done.wait (%p2274_p6), %s610_s15, 128  }
  0x59   : > { %2051 = vsyncadd (%p2274_p6), %s610_s15, 4294967168  ;;  %s619_s1 = sand.u32 1, %s2258_s24  }
  0x5a   : > { %s620_s22 = scalar_lea.sflag [#allocation9], %s619_s1 }
  0x5b   : > { %2053 = dma.done.wait (%p2274_p6), %s620_s22, 16  }
  0x5c   : > { %2055 = vsyncadd (%p2274_p6), %s620_s22, 4294967280  ;;  %s2411_s10 = sand.u32 1, %s2074_s30  }
  0x5d   : > { %2057 = dma.done.wait (%p2335_p10), %s620_s22, 16  }
  0x5e   : > { %2059 = vsyncadd (%p2335_p10), %s620_s22, 4294967280  ;;  %s638_s24 = scalar_lea.sflag [#allocation12], %s619_s1 }
  0x5f   : > { %2061 = dma.done.wait (%p2335_p10), %s638_s24, 32  }
  0x60   : > { %2063 = vsyncadd (%p2335_p10), %s638_s24, 4294967264  ;;  %s2698_s28 = sld [smem:[#allocation23_spill]]  ;;  %s2708_s11 = sshll.u32 %s2392_s2, 3 }
  0x61   : > { %s2700_s12 = sld [smem:[#allocation36_spill]] }
  0x62   : > { %s2701_s1 = sld [smem:[#allocation38_spill]] }
  0x63   : > { %s2703_s0 = sld [smem:[#allocation42_spill]] }
  0x64   : > { %s2704_s14 = sld [smem:[#allocation43_spill]] }
  0x65   : > { %s2705_s13 = sld [smem:[#allocation44_spill]] }
  0x66   : > { %p746_p3 = scmp.lt.s32.totalorder %s2698_s28, 1  ;;  %s2706_s21 = sld [smem:[#allocation45_spill]] }
  0x67   : > { %s2707_s25 = sld [smem:[#allocation46_spill]]  ;;  %p1586_p6 = scmp.ne.s32.totalorder %s2698_s28, 0 }
  0x68   : > { %s2425_s6 = scalar_select %p746_p3, %s2698_s28, 1 }
  0x6a   : > { %s1644_s19 = sshll.u32 %s2425_s6, 4  ;;  %s769_s26 = scalar_lea.vmem %s2704_s14, %s2425_s6 }
  0x6b   : > { %s750_s4 = scalar_lea.vmem %s2700_s12, %s1644_s19  ;;  %s2438_s22 = scalar_lea.vmem %s2701_s1, %s1644_s19 }
  0x6c   : > { %s2447_s3 = scalar_lea.vmem %s2703_s0, %s1644_s19  ;;  %s1647_s7 = sshll.u32 %s2425_s6, 5 }
  0x6d   : > { %s2457_s16 = scalar_lea.vmem %s2705_s13, %s1647_s7  ;;  %s777_s20 = scalar_lea.vmem %s2706_s21, %s2425_s6 }
  0x6e   : > { %s780_s9 = scalar_lea.vmem %s2707_s25, %s2425_s6  ;;  %s649_s0 = scalar_lea.vmem [#allocation13], %s2411_s10 }
  0x6f   : > { %s2470_s19 = scalar_lea.vmem [#allocation14], %s2708_s11  ;;  %785 = sbr.rel (%p1586_p6) target bundleno = 118 (0x76), region = 100 }
  0x74   : > { %v786_v0 = vld [vmem:[%s2398_s18] sm:$0xff]  ;;  %vm787_vm0 = vcmask 261120  }
  0x75   : > { %788 = vst.msk [vmem:[#allocation2] sm:$0xff] %vm787_vm0, %v786_v0 }
  0x76 PF: > { %v1649_v1 = vld [vmem:[%s750_s4 + $0x8] sm:$0xff]  ;;  %v1648_v2 = vld [vmem:[%s750_s4] sm:$0xff]  ;;  %vm811_vm1 = vcmask 261120   ;;  %s2709_s13 = scalar_lea.vmem [#allocation10], %s2411_s10  ;;  %vm828_vm2 = vcmask 785408   ;;  %s2112_s21 = smov 96  }
  0x77   : > { %821 = vmatpush.bf16.msra.mxu0 %v1649_v1  ;;  %v1795_v5 = vld [vmem:[%s2709_s13] ss:$0 sm:$0xff]  ;;  %s2113_s18 = smov 104   ;;  %s2114_s25 = smov 120   ;;  %vm841_vm3 = vcmask 64512   ;;  %vm876_vm4 = vcmask 1043456  }
  0x78   : > { %s2115_s28 = smov 88   ;;  %s2116_s4 = smov 80   ;;  %vm962_vm5 = vcmask 130112   ;;  %vm1030_vm6 = vcmask 195712   ;;  %vm1098_vm7 = vcmask 261312   ;;  %vm1253_vm12 = vcmask 523264  }
  0x79   : > { %s2117_s5 = smov 72   ;;  %s2118_s27 = smov 112  }
  0x7a   : > { %s2119_s14 = smov 64   ;;  %s2120_s7 = smov 56  }
  0x7b   : > { %822 = vmatpush.bf16.msra.mxu0 %v1648_v2  ;;  %s2710_s8 = scalar_lea.vmem [#allocation8], %s2392_s2  ;;  %s2121_s12 = smov 48  }
  0x7c   : > { %v2474_v3 = vld [vmem:[#allocation2] sm:$0xff]  ;;  %s2122_s15 = smov 40   ;;  %s2123_s1 = smov 8  }
  0x7d   : > { %v790_v4 = vpack.c.bf16 %v2474_v3, %v2474_v3  ;;  %v1796_v28 = vld [vmem:[%s2710_s8] ss:$0 sm:$0xff]  ;;  %s2124_s29 = smov 16   ;;  %s2125_s24 = smov 24  }
  0x7f   : > { %1595 = vmatmul.msk.bf16.vlgmr.msra.gmra.mxu0 %vm811_vm1, %v790_v4 }
  0xfc   : > { %v824_v6 = vpop.f32.mrf.mxu0 }
  0xfd   : > { %v825_v7 = vadd.f32 %v1795_v5, %v824_v6 }
  0xff   : > { %829 = vst.msk [vmem:[#allocation3] sm:$0xff] %vm828_vm2, %v825_v7 }
 0x104   : > { %v826_v8 = vpop.f32.mrf.mxu0 }
 0x106   : > { %v831_v9 = vld [vmem:[#allocation3] sm:$0xff] }
 0x107   : > { %v2481_v10 = vpack.c.bf16 %v831_v9, %v831_v9  ;;  %v832_v11 = vmul.f32 0.35355338, %v831_v9 }
 0x109   : > { %839 = vrot.lane.b32.xlu0 %v2481_v10, %s2112_s21  ;;  %v1034_v12 = vpack.c.bf16 %v832_v11, %v832_v11  ;;  %s2711_s21 = sld [smem:[#allocation39_spill]] }
 0x10b   : > { %1037 = vrot.lane.b32.xlu2 %v1034_v12, %s2113_s18  ;;  %901 = vrot.lane.b32.xlu1 %v1034_v12, %s2114_s25  ;;  %s2713_s25 = sld [smem:[#allocation40_spill]] }
 0x10f   : > { %s2712_s18 = scalar_lea.vmem %s2711_s21, %s2425_s6 }
 0x111   : > { %904 = vrot.lane.b32.xlu0 %v2481_v10, %s2115_s28  ;;  %s2714_s28 = scalar_lea.vmem %s2713_s25, %s2425_s6 }
 0x113   : > { %972 = vrot.lane.b32.xlu2 %v2481_v10, %s2116_s4  ;;  %1040 = vrot.lane.b32.xlu1 %v2481_v10, %s2117_s5  ;;  %s2715_s4 = scalar_lea.vmem [#allocation11], %s2411_s10 }
 0x119   : > { %969 = vrot.lane.b32.xlu0 %v1034_v12, %s2118_s27 }
 0x11b   : > { %871 = vrot.lane.b32.xlu2 %v2481_v10, %s2119_s14 }
 0x123   : > { %935 = vrot.lane.b32.xlu2 %v2481_v10, %s2120_s7 }
 0x165   : > { %v1038_v13 = vpop.permute.xlu2 %1037 }
 0x16d   : > { %v973_v14 = vpop.permute.xlu2 %972 }
 0x16e   : > { %v978_v15 = vsel %vm841_vm3, %v973_v14, 0 }
 0x16f   : > { %987 = vmatpush.bf16.xpose.msrb.mxu0 %v978_v15 }
 0x175   : > { %v872_v16 = vpop.permute.xlu2 %871 }
 0x176   : > { %v878_v17 = vsel %vm876_vm4, %v872_v16, 0 }
 0x177   : > { %887 = vmatpush.bf16.msra.mxu2 %v878_v17 }
 0x17b   : > { %v840_v18 = vpop.permute.xlu0 %839 }
 0x17c   : > { %v846_v19 = vsel %vm841_vm3, %v840_v18, 0 }
 0x17d   : > { %v902_v20 = vpop.permute.xlu1 %901  ;;  %v936_v21 = vpop.permute.xlu2 %935  ;;  %855 = vmatpush.bf16.xpose.msra.mxu1 %v846_v19 }
 0x17e   : > { %v941_v22 = vsel %vm876_vm4, %v936_v21, 0 }
 0x17f   : > { %950 = vmatpush.bf16.msrb.mxu2 %v941_v22 }
 0x183   : > { %v905_v23 = vpop.permute.xlu0 %904 }
 0x184   : > { %1596 = vmatmul.msk.bf16.vlgmr.msra.gmra.mxu1 %vm841_vm3, %v1034_v12  ;;  %v910_v24 = vsel %vm841_vm3, %v905_v23, 0 }
 0x185   : > { %v1041_v25 = vpop.permute.xlu1 %1040  ;;  %919 = vmatpush.bf16.xpose.msra.mxu3 %v910_v24 }
 0x186   : > { %v1046_v26 = vsel %vm841_vm3, %v1041_v25, 0 }
 0x18b   : > { %v970_v27 = vpop.permute.xlu0 %969 }
 0x18c   : > { %1598 = vmatmul.msk.bf16.vlgmr.msra.gmra.mxu3 %vm841_vm3, %v902_v20  ;;  %1600 = vmatmul.msk.bf16.vlgmr.msrb.gmra.mxu0 %vm841_vm3, %v970_v27 }
 0x18d   : > { %1055 = vmatpush.bf16.xpose.msrb.mxu3 %v1046_v26 }
 0x19c   : > { %1602 = vmatmul.msk.bf16.vlgmr.msrb.gmra.mxu3 %vm841_vm3, %v1038_v13 }
 0x201   : > { %v857_v29 = vpop.f32.mrf.mxu1 }
 0x202   : > { %v858_v30 = vadd.f32 %v1796_v28, %v857_v29 }
 0x204   : > { %v861_v31 = vsel %vm841_vm3, %v858_v30, -inf }
 0x205   : > { %862 = vmax.xlane.f32.xlu1 %v861_v31  ;;  %v1650_v31 = vld [vmem:[%s2438_s22] sm:$0xff] }
 0x209   : > { %v859_v32 = vpop.f32.mrf.mxu1  ;;  %v989_v33 = vpop.f32.mrf.mxu0 }
 0x20a   : > { %v990_v34 = vadd.f32 %v1796_v28, %v989_v33 }
 0x20c   : > { %v993_v35 = vsel %vm841_vm3, %v990_v34, -inf }
 0x20d   : > { %994 = vmax.xlane.f32.xlu1 %v993_v35 }
 0x20f   : > { %v921_v36 = vpop.f32.mrf.mxu3 }
 0x210   : > { %v922_v37 = vadd.f32 %v1796_v28, %v921_v36 }
 0x211   : > { %v991_v38 = vpop.f32.mrf.mxu0 }
 0x212   : > { %v925_v39 = vsel %vm841_vm3, %v922_v37, -inf }
 0x213   : > { %926 = vmax.xlane.f32.xlu0 %v925_v39 }
 0x217   : > { %v923_v40 = vpop.f32.mrf.mxu3 }
 0x21f   : > { %v1057_v41 = vpop.f32.mrf.mxu3 }
 0x220   : > { %v1058_v42 = vadd.f32 %v1796_v28, %v1057_v41 }
 0x222   : > { %v1061_v43 = vsel %vm841_vm3, %v1058_v42, -inf }
 0x223   : > { %1062 = vmax.xlane.f32.xlu2 %v1061_v43  ;;  %v2126_v43 = vmov 32.0  }
 0x226   : > { %1003 = vrot.lane.b32.xlu1 %v2481_v10, %s2121_s12 }
 0x227   : > { %v1059_v44 = vpop.f32.mrf.mxu3  ;;  %1071 = vrot.lane.b32.xlu0 %v2481_v10, %s2122_s15  ;;  %s2719_s15 = sld [smem:[#allocation23_spill]] }
 0x22d   : > { %p1639_p8 = scmp.ne.s32.totalorder %s2719_s15, 1 }
 0x278   : > { %v863_v45 = vpop.xlane.xlu1 %862 }
 0x279   : > { %v864_v46 = vsub.f32 %v858_v30, %v863_v45  ;;  %v1651_v30 = vld [vmem:[%s2438_s22 + $0x8] sm:$0xff] }
 0x27a   : > { %1131 = vmatpush.bf16.msra.mxu0 %v1651_v30 }
 0x27b   : > { %v865_v47 = vmul.f32 1.442695, %v864_v46 }
 0x27d   : > { %1804 = vpow2.f32 %v865_v47 }
 0x27e   : > { %1132 = vmatpush.bf16.msra.mxu0 %v1650_v31 }
 0x280   : > { %v995_v50 = vpop.xlane.xlu1 %994 }
 0x281   : > { %v996_v53 = vsub.f32 %v990_v34, %v995_v50 }
 0x283   : > { %v1805_v48 = vpop.eup %1804  ;;  %v997_v55 = vmul.f32 1.442695, %v996_v53 }
 0x284   : > { %v870_v49 = vpack.c.bf16 %v1805_v48, %v1805_v48  ;;  %v867_v8 = vsel %vm841_vm3, %v1805_v48, 0.0 }
 0x286   : > { %v927_v51 = vpop.xlane.xlu0 %926  ;;  %1597 = vmatmul.msk.bf16.vlgmr.msra.gmra.mxu2 %vm841_vm3, %v870_v49 }
 0x287   : > { %v928_v52 = vsub.f32 %v922_v37, %v927_v51  ;;  %v1797_v37 = vld [vmem:[%s2712_s18] ss:$0 sm:$0xff] }
 0x289   : > { %v929_v54 = vmul.f32 1.442695, %v928_v52 }
 0x28b   : > { %1806 = vpow2.f32 %v929_v54  ;;  %v1653_v54 = vld [vmem:[%s2447_s3 + $0x8] sm:$0xff] }
 0x28c   : > { %1808 = vpow2.f32 %v997_v55  ;;  %v1652_v55 = vld [vmem:[%s2447_s3] sm:$0xff] }
 0x291   : > { %v1807_v56 = vpop.eup %1806 }
 0x292   : > { %v931_v57 = vsel %vm841_vm3, %v1807_v56, 0.0  ;;  %v934_v58 = vpack.c.bf16 %v1807_v56, %v1807_v56  ;;  %v1809_v60 = vpop.eup %1808  ;;  %v1657_v56 = vld [vmem:[%s2457_s16 + $0x18] sm:$0xff] }
 0x293   : > { %932 = vadd.xlane.f32.xlu2 %v931_v57  ;;  %v999_v4 = vsel %vm841_vm3, %v1809_v60, 0.0  ;;  %v1002_v5 = vpack.c.bf16 %v1809_v60, %v1809_v60  ;;  %1261 = vmatpush.bf16.msra.mxu3 %v1657_v56 }
 0x296   : > { %v1063_v59 = vpop.xlane.xlu2 %1062  ;;  %1599 = vmatmul.msk.bf16.vlgmr.msrb.gmra.mxu2 %vm841_vm3, %v934_v58 }
 0x297   : > { %v1064_v61 = vsub.f32 %v1058_v42, %v1063_v59  ;;  %v1656_v59 = vld [vmem:[%s2457_s16 + $0x10] sm:$0xff] }
 0x298   : > { %v1004_v62 = vpop.permute.xlu1 %1003  ;;  %1262 = vmatpush.bf16.msra.mxu3 %v1656_v59 }
 0x299   : > { %v1065_v63 = vmul.f32 1.442695, %v1064_v61  ;;  %v1072_v0 = vpop.permute.xlu0 %1071  ;;  %v1009_v1 = vsel %vm876_vm4, %v1004_v62, 0 }
 0x29a   : > { %v1077_v2 = vsel %vm876_vm4, %v1072_v0, 0  ;;  %1018 = vmatpush.bf16.msrb.mxu1 %v1009_v1 }
 0x29b   : > { %1810 = vpow2.f32 %v1065_v63  ;;  %1086 = vmatpush.bf16.msra.mxu2 %v1077_v2  ;;  %1000 = vadd.xlane.f32.xlu2 %v999_v4  ;;  %v1798_v4 = vld [vmem:[%s2714_s28] ss:$0 sm:$0xff] }
 0x29d   : > { %1601 = vmatmul.msk.bf16.vlgmr.msrb.gmra.mxu1 %vm841_vm3, %v1002_v5 }
 0x29e   : > { %1208 = vmatpush.bf16.msra.mxu1 %v1653_v54 }
 0x2a1   : > { %v1811_v6 = vpop.eup %1810 }
 0x2a2   : > { %v1067_v7 = vsel %vm841_vm3, %v1811_v6, 0.0  ;;  %v1070_v9 = vpack.c.bf16 %v1811_v6, %v1811_v6  ;;  %1209 = vmatpush.bf16.msra.mxu1 %v1652_v55  ;;  %v1799_v6 = vld [vmem:[%s2715_s4] ss:$0 sm:$0xff] }
 0x2a3   : > { %1068 = vadd.xlane.f32.xlu0 %v1067_v7  ;;  %868 = vadd.xlane.f32.xlu2 %v867_v8 }
 0x2a6   : > { %1603 = vmatmul.msk.bf16.vlgmr.msra.gmra.mxu2 %vm841_vm3, %v1070_v9 }
 0x306   : > { %v933_v10 = vpop.xlane.xlu2 %932 }
 0x307   : > { %1812 = vrcp.f32 %v933_v10 }
 0x309   : > { %v889_v11 = vpop.f32.mrf.mxu2 }
 0x30d   : > { %v1813_v15 = vpop.eup %1812 }
 0x30e   : > { %v1001_v12 = vpop.xlane.xlu2 %1000 }
 0x30f   : > { %1814 = vrcp.f32 %v1001_v12  ;;  %v1654_v12 = vld [vmem:[%s2457_s16] sm:$0xff] }
 0x311   : > { %v891_v13 = vpop.f32.mrf.mxu2 }
 0x312   : > { %v1800_v13 = vld [vmem:[%s769_s26] ss:$0 sm:$0xff] }
 0x315   : > { %v1815_v17 = vpop.eup %1814 }
 0x316   : > { %v869_v14 = vpop.xlane.xlu2 %868  ;;  %v1069_v23 = vpop.xlane.xlu0 %1068 }
 0x317   : > { %1816 = vrcp.f32 %v869_v14 }
 0x318   : > { %1818 = vrcp.f32 %v1069_v23 }
 0x319   : > { %v952_v16 = vpop.f32.mrf.mxu2  ;;  %1820 = vrcp.f32 %v2126_v43 }
 0x31a   : > { %v957_v18 = vmul.f32 %v1813_v15, %v952_v16  ;;  %v1020_v19 = vpop.f32.mrf.mxu1 }
 0x31b   : > { %v1025_v20 = vmul.f32 %v1815_v17, %v1020_v19  ;;  %v1801_v19 = vld [vmem:[%s777_s20] ss:$0 sm:$0xff] }
 0x31c   : > { %959 = vrot.lane.b32.xlu1 %v957_v18, %s2123_s1 }
 0x31d   : > { %1027 = vrot.lane.b32.xlu2 %v1025_v20, %s2124_s29  ;;  %v1817_v21 = vpop.eup %1816 }
 0x31e   : > { %v894_v22 = vmul.f32 %v1817_v21, %v889_v11  ;;  %v1819_v26 = vpop.eup %1818  ;;  %v1655_v11 = vld [vmem:[%s2457_s16 + $0x8] sm:$0xff] }
 0x31f   : > { %v1821_v44 = vpop.eup %1820  ;;  %1263 = vmatpush.bf16.msra.mxu3 %v1655_v11 }
 0x320   : > { %895 = vst.msk [vmem:[#allocation4] sm:$0xff] %vm841_vm3, %v894_v22  ;;  %v1145_v45 = vmul.f32 32.0, %v1821_v44  ;;  %vm1149_vm8 = vweird.f32 %v1821_v44 }
 0x321   : > { %v954_v24 = vpop.f32.mrf.mxu2 }
 0x322   : > { %v1022_v25 = vpop.f32.mrf.mxu1  ;;  %v1146_v46 = vsub.f32 1.0, %v1145_v45 }
 0x323   : > { %1264 = vmatpush.bf16.msra.mxu3 %v1654_v12 }
 0x324   : > { %v1147_v47 = vmul.f32 %v1821_v44, %v1146_v46 }
 0x326   : > { %v1148_v48 = vadd.f32 %v1821_v44, %v1147_v47 }
 0x328   : > { %v1150_v49 = vsel %vm1149_vm8, %v1821_v44, %v1148_v48 }
 0x329   : > { %v1088_v27 = vpop.f32.mrf.mxu2 }
 0x32a   : > { %v1093_v28 = vmul.f32 %v1819_v26, %v1088_v27 }
 0x32c   : > { %1095 = vrot.lane.b32.xlu1 %v1093_v28, %s2125_s24 }
 0x331   : > { %v1090_v29 = vpop.f32.mrf.mxu2 }
 0x377   : > { %v1028_v33 = vpop.permute.xlu2 %1027 }
 0x38e   : > { %v960_v32 = vpop.permute.xlu1 %959 }
 0x38f   : > { %963 = vst.msk [vmem:[#allocation4] sm:$0xff] %vm962_vm5, %v960_v32 }
 0x390   : > { %1031 = vst.msk [vmem:[#allocation4] sm:$0xff] %vm1030_vm6, %v1028_v33 }
 0x39e   : > { %v1096_v34 = vpop.permute.xlu1 %1095 }
 0x39f   : > { %1099 = vst.msk [vmem:[#allocation4] sm:$0xff] %vm1098_vm7, %v1096_v34 }
 0x3a6   : > { %v1100_v35 = vld [vmem:[#allocation4] sm:$0xff] }
 0x3a7   : > { %v1101_v36 = vpack.c.bf16 %v1100_v35, %v1100_v35 }
 0x3a9   : > { %1612 = vmatmul.msk.bf16.vlgmr.msra.gmra.mxu0 %vm811_vm1, %v1101_v36 }
 0x426   : > { %v1134_v38 = vpop.f32.mrf.mxu0 }
 0x427   : > { %v1135_v39 = vadd.f32 %v1797_v37, %v1134_v38 }
 0x429   : > { %v1138_v40 = vadd.f32 %v1135_v39, %v2474_v3  ;;  %v1802_v39 = vld [vmem:[%s780_s9] ss:$0 sm:$0xff] }
 0x42b   : > { %v1141_v41 = vsel %vm811_vm1, %v1138_v40, 0.0 }
 0x42c   : > { %1142 = vadd.xlane.f32.xlu1 %v1141_v41  ;;  %v1803_v41 = vld [vmem:[%s649_s0] ss:$0 sm:$0xff] }
 0x42e   : > { %v1136_v42 = vpop.f32.mrf.mxu0 }
 0x49f   : > { %v1143_v50 = vpop.xlane.xlu1 %1142 }
 0x4a0   : > { %v1151_v51 = vmul.f32 %v1150_v49, %v1143_v50 }
 0x4a2   : > { %v1152_v3 = vsub.f32 %v1138_v40, %v1151_v51 }
 0x4a4   : > { %v1153_v52 = vmul.f32 %v1152_v3, %v1152_v3 }
 0x4a6   : > { %v1154_v53 = vsel %vm811_vm1, %v1153_v52, 0.0 }
 0x4a7   : > { %1155 = vadd.xlane.f32.xlu2 %v1154_v53 }
 0x51a   : > { %v1156_v57 = vpop.xlane.xlu2 %1155 }
 0x51b   : > { %v1157_v58 = vmul.f32 %v1156_v57, %v1150_v49 }
 0x51d   : > { %v1158_v60 = vadd.f32 1e-05, %v1157_v58 }
 0x51f   : > { %1822 = vrsqrt.f32 %v1158_v60  ;;  %vm1165_vm10 = vweird.f32 %v1158_v60 }
 0x525   : > { %v1823_v61 = vpop.eup %1822 }
 0x526   : > { %v1160_v62 = vmul.f32 %v1823_v61, %v1158_v60  ;;  %vm1166_vm9 = vweird.f32 %v1823_v61 }
 0x527   : > { %vm1167_vm11 = vmor %vm1165_vm10, %vm1166_vm9 }
 0x528   : > { %v1161_v63 = vmul.f32 %v1823_v61, %v1160_v62 }
 0x52a   : > { %v1162_v0 = vmul.f32 0.5, %v1161_v63 }
 0x52c   : > { %v1163_v1 = vsub.f32 1.5, %v1162_v0 }
 0x52e   : > { %v1164_v2 = vmul.f32 %v1823_v61, %v1163_v1 }
 0x530   : > { %v1168_v5 = vsel %vm1167_vm11, %v1823_v61, %v1164_v2 }
 0x531   : > { %v1169_v7 = vmul.f32 %v1168_v5, %v1152_v3 }
 0x533   : > { %v1173_v8 = vmul.f32 %v1798_v4, %v1169_v7 }
 0x535   : > { %v1177_v9 = vadd.f32 %v1799_v6, %v1173_v8 }
 0x537   : > { %v1178_v10 = vpack.c.bf16 %v1177_v9, %v1177_v9 }
 0x539   : > { %1621 = vmatmul.msk.bf16.vlgmr.msra.gmra.mxu1 %vm811_vm1, %v1178_v10 }
 0x5b6   : > { %v1211_v14 = vpop.f32.mrf.mxu1 }
 0x5b7   : > { %v1212_v15 = vadd.f32 %v1800_v13, %v1211_v14 }
 0x5b9   : > { %v1215_v16 = vmax.f32 %v1212_v15, 0.0 }
 0x5bb   : > { %v1216_v17 = vpack.c.bf16 %v1215_v16, %v1215_v16 }
 0x5bd   : > { %1638 = vmatmul.msk.bf16.vlgmr.msra.gmra.mxu3 %vm1253_vm12, %v1216_v17 }
 0x5be   : > { %v1213_v18 = vpop.f32.mrf.mxu1 }
 0x640   : > { %v1266_v20 = vpop.f32.mrf.mxu3 }
 0x641   : > { %v1267_v21 = vadd.f32 %v1801_v19, %v1266_v20 }
 0x643   : > { %v1270_v22 = vadd.f32 %v1267_v21, %v1177_v9 }
 0x645   : > { %v1273_v23 = vsel %vm811_vm1, %v1270_v22, 0.0 }
 0x646   : > { %1274 = vadd.xlane.f32.xlu0 %v1273_v23 }
 0x648   : > { %v1268_v24 = vpop.f32.mrf.mxu3 }
 0x6b9   : > { %v1275_v25 = vpop.xlane.xlu0 %1274 }
 0x6ba   : > { %v1276_v26 = vmul.f32 %v1275_v25, %v1150_v49 }
 0x6bc   : > { %v1277_v27 = vsub.f32 %v1270_v22, %v1276_v26 }
 0x6be   : > { %v1278_v28 = vmul.f32 %v1277_v27, %v1277_v27 }
 0x6c0   : > { %v1279_v29 = vsel %vm811_vm1, %v1278_v28, 0.0 }
 0x6c1   : > { %1280 = vadd.xlane.f32.xlu0 %v1279_v29 }
 0x734   : > { %v1281_v30 = vpop.xlane.xlu0 %1280 }
 0x735   : > { %v1282_v31 = vmul.f32 %v1281_v30, %v1150_v49 }
 0x737   : > { %v1283_v32 = vadd.f32 1e-05, %v1282_v31 }
 0x739   : > { %1824 = vrsqrt.f32 %v1283_v32  ;;  %vm1290_vm14 = vweird.f32 %v1283_v32 }
 0x73f   : > { %v1825_v33 = vpop.eup %1824 }
 0x740   : > { %v1285_v34 = vmul.f32 %v1825_v33, %v1283_v32  ;;  %vm1291_vm13 = vweird.f32 %v1825_v33 }
 0x741   : > { %vm1292_vm15 = vmor %vm1290_vm14, %vm1291_vm13 }
 0x742   : > { %v1286_v35 = vmul.f32 %v1825_v33, %v1285_v34 }
 0x744   : > { %v1287_v36 = vmul.f32 0.5, %v1286_v35 }
 0x746   : > { %v1288_v37 = vsub.f32 1.5, %v1287_v36 }
 0x748   : > { %v1289_v38 = vmul.f32 %v1825_v33, %v1288_v37 }
 0x74a   : > { %v1293_v40 = vsel %vm1292_vm15, %v1825_v33, %v1289_v38 }
 0x74b   : > { %v1294_v42 = vmul.f32 %v1293_v40, %v1277_v27 }
 0x74d   : > { %v1298_v43 = vmul.f32 %v1802_v39, %v1294_v42  ;;  %1307 = sbr.rel (%p1639_p8) target bundleno = 1875 (0x753), region = 104 }
 0x74f   : > { %v1302_v44 = vadd.f32 %v1803_v41, %v1298_v43 }
 0x751   : > { %1303 = vst.msk [vmem:[#allocation2] sm:$0xff] %vm811_vm1, %v1302_v44 }
 0x752   : > { %1308 = vst.msk [vmem:[%s2470_s19] sm:$0xff] %vm811_vm1, %v1302_v44 }
 0x753 PF: > { %s2720_s1 = sld [smem:[#allocation24_spill]]  ;;  %s1322_s11 = sshll.u32 %s2470_s19, 4  ;;  %s1323_s11 = int_to_ptr.vmem [resolvable:$true] %s1322_s11 }
 0x754   : > { %s2721_s6 = sld [smem:[#allocation27_spill]]  ;;  %s1310_s21 = scalar_lea.sflag [#allocation7], %s2392_s2 }
 0x755   : > { %s2722_s0 = sld [smem:[#allocation48_spill]] }
 0x759   : > { %s1641_s9 = sshll.u32 %s2720_s1, 3 }
 0x75a   : > { %p2723_p10 = scmp.ne.s32.totalorder %s2721_s6, 0 }
 0x75b   : > { %s1320_s24 = scalar_lea.hbm %s2722_s0, %s1641_s9  ;;  %s1996_s28 = scalar_lea.hbm %s2722_s0, 16 }
 0x75c   : > { %s1324_s13 = sshll.u32 %s1320_s24, 4  ;;  %s1325_s13 = int_to_ptr.hbm [resolvable:$true] %s1324_s13 }
 0x75d   : > { %s1990_s18 = sshra.s32 %s1325_s13, 4  ;;  %s1991_s18 = int_to_ptr.hbm [resolvable:$true] %s1990_s18 }
 0x75e   : > { %s1992_s3 = scalar_lea.hbm %s1991_s18, 8  ;;  %p1997_p2 = scmp.lt.s32.totalorder %s1991_s18, %s2722_s0 }
 0x75f   : > { %p1993_p9 = scmp.ne.s32.totalorder %s1991_s18, %s1992_s3  ;;  %p1998_p4 = scmp.lt.s32.totalorder %s1996_s28, %s1992_s3 }
 0x761   : > { %p1994_p11 = pnand %p1993_p9, %p2723_p10  ;;  %p1999_p5 = por %p1998_p4, %p1997_p2 }
 0x763   : > { %p1995_p0 = pneg %p1994_p11 }
 0x765   : > { %p2000_p7 = pnand %p1999_p5, %p1995_p0 }
 0x767   : > { %2003 = shalt.err (!%p2000_p7)
}
 0x768   : > { %1668 = dma.vmem_to_hbm [thread:$0]  (%p2723_p10), %s1323_s11, 128, %s1325_s13, %s1310_s21  }
 0x769 PF: > { %s2724_s2 = sld [smem:[#allocation21_spill]]  ;;  %p1691_p12 = scmp.ge.s32.totalorder %s2110_s23, 2 }
 0x76a   : > { %s2725_s19 = sld [smem:[#allocation28_spill]] }
 0x76f   : > { %s1336_s27 = sand.u32 1, %s2724_s2  }
 0x770   : > { %p2726_p13 = scmp.ne.s32.totalorder %s2725_s19, 0  ;;  %s1337_s14 = scalar_lea.sflag [#allocation7], %s1336_s27 }
 0x772   : > { %p1687_p1 = pnand %p1691_p12, %p2726_p13 }
 0x774   : > { %p1688_p3 = pneg %p1687_p1 }
 0x776   : > { %2065 = dma.done.wait (%p1688_p3), %s1337_s14, 128  }
 0x777   : > { %2067 = vsyncadd (%p1688_p3), %s1337_s14, 4294967168  ;;  %s36_s23 = sadd.s32 1, %s2110_s23   ;;  %s2727_s7 = sld [smem:[#allocation20_spill]] }
 0x778   : > { %p33_p6 = scmp.ge.s32.totalorder %s36_s23, 6   ;;  %s2728_s15 = sld [smem:[#allocation32_spill]] }
 0x779   : > { %s2729_s8 = sld [smem:[#allocation22_spill]]  ;;  %s2735_s29 = smov %s2074_s30 }
 0x77a   : > { %s2730_s18 = sld [smem:[#allocation33_spill]]  ;;  %s2737_s16 = smov %s2086_s17 }
 0x77b   : > { %s2731_s19 = sld [smem:[#allocation25_spill]]  ;;  %35 = sbr.rel (!%p33_p6) target bundleno = 29 (0x1d), region = 204 }
 0x77c   : > { %s2732_s20 = sld [smem:[#allocation26_spill]] }
 0x77d   : > { %s2733_s21 = sld [smem:[#allocation29_spill]]  ;;  %s2736_s30 = smov %s2727_s7 }
 0x77e   : > { %s2734_s22 = sld [smem:[#allocation31_spill]] }
 0x77f   : > { %s2738_s17 = smov %s2729_s8 }
 0x780   :  { %1343 = vsyncpa [#allocation6], 1 }
 0x781   :  { %1345 = vsyncpa [#allocation6 + $0x1], 1 }
 0x782   :  { %1346 = vsyncpa [#allocation9], 1 }
 0x783   :  { %1348 = vsyncpa [#allocation9 + $0x1], 1 }
 0x784   :  { %1349 = vsyncpa [#allocation12], 1 }
 0x785   :  { %1351 = vsyncpa [#allocation12 + $0x1], 1 }
 0x786   :  { %1352 = vsyncpa [#allocation7], 1 }
 0x787   :  { %1354 = vsyncpa [#allocation7 + $0x1], 1 }

</bundles_post_ra>
